<compile_context>
chip_gen: v7x
topology: tpu7x:2x2x1
jax: 0.10.0
libtpu: 0.0.40
codegen_flags: <defaults>
</compile_context>

<pallas_src>
import math
from functools import partial

import jax
import jax.numpy as jnp
from jax.experimental import pallas as pl
from jax.experimental.pallas import tpu as pltpu


# Inter-block activation storage dtype. Kept f32 so the strict 5e-3 correctness gate below is
# meaningful; switch to jnp.bfloat16 to additionally halve activation HBM traffic.
_ACT_DTYPE = jnp.float32

_COMPILER_PARAMS = pltpu.CompilerParams(
    dimension_semantics=("parallel",),
    vmem_limit_bytes=32 * 1024 * 1024,
)


# ---------------------------------------------------------------------------
# Row tiling helper
# ---------------------------------------------------------------------------

def _row_tiling(M, cap=512):
    """Return (tm, padded_M): tm is a multiple of 8, <= cap, divides padded_M, >=2 steps if possible."""
    t = min(cap, max(8, M - M % 8))
    while t >= 8:
        if M % t == 0 and M // t >= 2:
            return t, M
        t -= 8
    if M % 8 == 0 and M <= cap:
        return M, M            # tiny M: single step
    tm = 128                   # no clean divisor: pad rows up to a multiple of 128
    return tm, ((M + tm - 1) // tm) * tm


# ---------------------------------------------------------------------------
# Pallas kernels
# ---------------------------------------------------------------------------

def _make_bn_relu_conv1x1_kernel(has_residual):
    """out = relu(x*scale+shift)_bf16 @ W_bf16 + b [+ residual]; f32 accumulate."""
    def kernel(x_ref, scale_ref, shift_ref, w_ref, b_ref, *rest):
        if has_residual:
            res_ref, o_ref = rest
        else:
            (o_ref,) = rest
        a = x_ref[...].astype(jnp.float32) * scale_ref[...] + shift_ref[...]
        a = jnp.maximum(a, 0.0).astype(jnp.bfloat16)
        out = jnp.dot(a, w_ref[...], preferred_element_type=jnp.float32) + b_ref[...]
        if has_residual:
            out = out + res_ref[...].astype(jnp.float32)
        o_ref[...] = out.astype(o_ref.dtype)
    return kernel


def _down_entry_kernel(x_ref, scale_ref, shift_ref, wi_ref, bi_ref, w1_ref, b1_ref,
                       oi_ref, o1_ref):
    """Reads x once; produces identity = x @ Wi + bi  and  out1 = relu(bn(x)) @ W1 + b1."""
    x = x_ref[...]
    oi_ref[...] = (jnp.dot(x.astype(jnp.bfloat16), wi_ref[...],
                           preferred_element_type=jnp.float32)
                   + bi_ref[...]).astype(oi_ref.dtype)
    a = jnp.maximum(x.astype(jnp.float32) * scale_ref[...] + shift_ref[...], 0.0)
    o1_ref[...] = (jnp.dot(a.astype(jnp.bfloat16), w1_ref[...],
                           preferred_element_type=jnp.float32)
                   + b1_ref[...]).astype(o1_ref.dtype)


def _conv3x3_kernel(x_ref, scale_ref, shift_ref, w_ref, b_ref, mm_ref, mp_ref,
                    o_ref, acc_ref, *, W):
    """BN -> ReLU -> 3x3 conv (padding=1, stride=1) on one flattened image, fused.

    The 3x3 conv is decomposed into 9 shifted 1x1 taps on the flattened (H*W, C) activation:
    out[j] += a[j + s] @ w[dy,dx] with s = (dy-1)*W + (dx-1); column wrap at row boundaries is
    removed by multiplying `a` with precomputed 0/1 masks, row validity by the slice ranges.
    """
    M = acc_ref.shape[0]
    a0 = x_ref[0].astype(jnp.float32) * scale_ref[...] + shift_ref[...]
    a0 = jnp.maximum(a0, 0.0).astype(jnp.bfloat16)
    a_m = a0 * mm_ref[...]          # zero where x_in == W-1 (used for dx offset -1)
    a_p = a0 * mp_ref[...]          # zero where x_in == 0   (used for dx offset +1)
    a_by_dx = (a_m, a0, a_p)

    acc_ref[...] = jnp.zeros_like(acc_ref)
    for dy in range(3):
        for dx in range(3):
            s = (dy - 1) * W + (dx - 1)
            contrib = jnp.dot(a_by_dx[dx], w_ref[dy * 3 + dx],
                              preferred_element_type=jnp.float32)
            o_lo, o_hi = max(0, -s), M - max(0, s)
            i_lo, i_hi = max(0, s), M - max(0, -s)
            acc_ref[o_lo:o_hi, :] += contrib[i_lo:i_hi, :]

    o_ref[0] = (acc_ref[...] + b_ref[...]).astype(o_ref.dtype)


# ---------------------------------------------------------------------------
# Pallas-call wrappers (NHWC in, NHWC out)
# ---------------------------------------------------------------------------

def bn_relu_conv1x1(x_nhwc, bn, conv, residual=None):
    n, h, w_, c = x_nhwc.shape
    scale, shift = bn
    wt, b = conv                        # wt: (1, 1, C, Cout)
    cout = wt.shape[-1]
    x2d = x_nhwc.reshape(-1, c)
    res2d = None if residual is None else residual.reshape(-1, cout)
    M = n * h * w_
    tm, Mp = _row_tiling(M)
    if Mp != M:
        x2d = jnp.pad(x2d, ((0, Mp - M), (0, 0)))
        if res2d is not None:
            res2d = jnp.pad(res2d, ((0, Mp - M), (0, 0)))

    in_specs = [
        pl.BlockSpec((tm, c), lambda i: (i, 0)),
        pl.BlockSpec((1, c), lambda i: (0, 0)),
        pl.BlockSpec((1, c), lambda i: (0, 0)),
        pl.BlockSpec((c, cout), lambda i: (0, 0)),
        pl.BlockSpec((1, cout), lambda i: (0, 0)),
    ]
    args = [x2d, scale.reshape(1, c), shift.reshape(1, c),
            wt.reshape(c, cout).astype(jnp.bfloat16), b.reshape(1, cout)]
    if res2d is not None:
        in_specs.append(pl.BlockSpec((tm, cout), lambda i: (i, 0)))
        args.append(res2d)

    out = pl.pallas_call(
        _make_bn_relu_conv1x1_kernel(res2d is not None),
        out_shape=jax.ShapeDtypeStruct((Mp, cout), _ACT_DTYPE),
        grid=(Mp // tm,),
        in_specs=in_specs,
        out_specs=pl.BlockSpec((tm, cout), lambda i: (i, 0)),
        compiler_params=_COMPILER_PARAMS,
    )(*args)
    if Mp != M:
        out = out[:M]
    return out.reshape(n, h, w_, cout)


def down_entry(xs, conv_id, bn1, c1):
    """Fused identity 1x1 conv + first ResBlock 1x1 conv of a DownBottleneck (x read once)."""
    n, h, w_, c = xs.shape
    wi, bi = conv_id
    scale, shift = bn1
    w1, b1 = c1
    cid, cmid = wi.shape[-1], w1.shape[-1]
    x2d = xs.reshape(-1, c)
    M = n * h * w_
    tm, Mp = _row_tiling(M)
    if Mp != M:
        x2d = jnp.pad(x2d, ((0, Mp - M), (0, 0)))

    out_id, out1 = pl.pallas_call(
        _down_entry_kernel,
        out_shape=(jax.ShapeDtypeStruct((Mp, cid), _ACT_DTYPE),
                   jax.ShapeDtypeStruct((Mp, cmid), _ACT_DTYPE)),
        grid=(Mp // tm,),
        in_specs=[
            pl.BlockSpec((tm, c), lambda i: (i, 0)),
            pl.BlockSpec((1, c), lambda i: (0, 0)),
            pl.BlockSpec((1, c), lambda i: (0, 0)),
            pl.BlockSpec((c, cid), lambda i: (0, 0)),
            pl.BlockSpec((1, cid), lambda i: (0, 0)),
            pl.BlockSpec((c, cmid), lambda i: (0, 0)),
            pl.BlockSpec((1, cmid), lambda i: (0, 0)),
        ],
        out_specs=(pl.BlockSpec((tm, cid), lambda i: (i, 0)),
                   pl.BlockSpec((tm, cmid), lambda i: (i, 0))),
        compiler_params=_COMPILER_PARAMS,
    )(x2d, scale.reshape(1, c), shift.reshape(1, c),
      wi.reshape(c, cid).astype(jnp.bfloat16), bi.reshape(1, cid),
      w1.reshape(c, cmid).astype(jnp.bfloat16), b1.reshape(1, cmid))
    if Mp != M:
        out_id, out1 = out_id[:M], out1[:M]
    return (out_id.reshape(n, h, w_, cid), out1.reshape(n, h, w_, cmid))


def res_block_3x3(x_nhwc, bn, conv):
    n, h, w_, c = x_nhwc.shape
    scale, shift = bn
    wt, b = conv                        # wt: (3, 3, C, Cout)
    cout = wt.shape[-1]
    hw = h * w_
    x3 = x_nhwc.reshape(n, hw, c)

    xcol = jnp.arange(hw, dtype=jnp.int32) % w_
    mask_m = (xcol < (w_ - 1)).astype(jnp.bfloat16).reshape(hw, 1)
    mask_p = (xcol > 0).astype(jnp.bfloat16).reshape(hw, 1)

    out = pl.pallas_call(
        partial(_conv3x3_kernel, W=w_),
        out_shape=jax.ShapeDtypeStruct((n, hw, cout), _ACT_DTYPE),
        grid=(n,),
        in_specs=[
            pl.BlockSpec((1, hw, c), lambda i: (i, 0, 0)),
            pl.BlockSpec((1, c), lambda i: (0, 0)),
            pl.BlockSpec((1, c), lambda i: (0, 0)),
            pl.BlockSpec((9, c, cout), lambda i: (0, 0, 0)),
            pl.BlockSpec((1, cout), lambda i: (0, 0)),
            pl.BlockSpec((hw, 1), lambda i: (0, 0)),
            pl.BlockSpec((hw, 1), lambda i: (0, 0)),
        ],
        out_specs=pl.BlockSpec((1, hw, cout), lambda i: (i, 0, 0)),
        scratch_shapes=[pltpu.VMEM((hw, cout), jnp.float32)],
        compiler_params=_COMPILER_PARAMS,
    )(x3, scale.reshape(1, c), shift.reshape(1, c),
      wt.reshape(9, c, cout).astype(jnp.bfloat16), b.reshape(1, cout),
      mask_m, mask_p)
    return out.reshape(n, h, w_, cout)


# ---------------------------------------------------------------------------
# Module forward (NHWC internally)
# ---------------------------------------------------------------------------

def down_bottleneck(x, p):
    xs = x[:, ::2, ::2, :]                       # shared stride-2 subsample (materialized once)
    identity, out = down_entry(xs, p['conv1'], p['bn1'], p['c1'])
    out = res_block_3x3(out, p['bn2'], p['c2'])
    out = bn_relu_conv1x1(out, p['bn3'], p['c3'], residual=identity)
    return out


def bottleneck(x, p):
    out = bn_relu_conv1x1(x, p['bn1'], p['c1'])
    out = res_block_3x3(out, p['bn2'], p['c2'])
    out = bn_relu_conv1x1(out, p['bn3'], p['c3'], residual=x)
    return out


def layer_forward(x_nchw, params):
    x = jnp.transpose(x_nchw, (0, 2, 3, 1)).astype(_ACT_DTYPE)   # NCHW -> NHWC
    for kind, p in params:
        x = down_bottleneck(x, p) if kind == 'down' else bottleneck(x, p)
    return jnp.transpose(x, (0, 3, 1, 2))                        # back to NCHW


# ---------------------------------------------------------------------------
# Deterministic parameter initialization (synthetic, PyTorch-like shapes)
# ---------------------------------------------------------------------------

def init_conv(key, cin, cout, k):
    kw, kb = jax.random.split(key)
    fan_in = cin * k * k
    bound = 1.0 / math.sqrt(fan_in)
    w = jax.random.uniform(kw, (k, k, cin, cout), jnp.float32, -bound, bound)
    b = jax.random.uniform(kb, (cout,), jnp.float32, -bound, bound)
    return (w, b)


def init_bn(key, c):
    k1, k2, k3, k4 = jax.random.split(key, 4)
    gamma = 1.0 + 0.1 * jax.random.normal(k1, (c,), jnp.float32)
    beta = 0.1 * jax.random.normal(k2, (c,), jnp.float32)
    mean = 0.1 * jax.random.normal(k3, (c,), jnp.float32)
    var = jnp.abs(jax.random.normal(k4, (c,), jnp.float32)) + 0.5
    scale = gamma / jnp.sqrt(var + 1e-5)
    shift = beta - mean * scale
    return (scale, shift)


def init_down_bottleneck(key, cin, cout):
    ks = jax.random.split(key, 7)
    mid = cout // 4
    return {
        'conv1': init_conv(ks[0], cin, cout, 1),
        'bn1': init_bn(ks[1], cin),  'c1': init_conv(ks[2], cin, mid, 1),
        'bn2': init_bn(ks[3], mid),  'c2': init_conv(ks[4], mid, mid, 3),
        'bn3': init_bn(ks[5], mid),  'c3': init_conv(ks[6], mid, cout, 1),
    }


def init_bottleneck(key, cin, cout):
    ks = jax.random.split(key, 6)
    mid = cout // 4
    return {
        'bn1': init_bn(ks[0], cin),  'c1': init_conv(ks[1], cin, mid, 1),
        'bn2': init_bn(ks[2], mid),  'c2': init_conv(ks[3], mid, mid, 3),
        'bn3': init_bn(ks[4], mid),  'c3': init_conv(ks[5], mid, cout, 1),
    }


def init_layer(key, in_ch, layer_list):
    keys = jax.random.split(key, len(layer_list))
    params = [('down', init_down_bottleneck(keys[0], in_ch, layer_list[0]))]
    cin = layer_list[0]
    for k, v in zip(keys[1:], layer_list[1:]):
        params.append(('bottleneck', init_bottleneck(k, cin, v)))
        cin = v
    return params


# ---------------------------------------------------------------------------
# Pure-JAX reference (mirrors the bf16 operand casts / activation dtype of the Pallas path)
# ---------------------------------------------------------------------------

def _q(t):
    return t.astype(_ACT_DTYPE)


def _ref_conv(a, conv, stride, padding):
    wt, b = conv
    out = jax.lax.conv_general_dilated(
        a.astype(jnp.bfloat16), wt.astype(jnp.bfloat16),
        window_strides=(stride, stride),
        padding=[(padding, padding), (padding, padding)],
        dimension_numbers=('NHWC', 'HWIO', 'NHWC'),
        preferred_element_type=jnp.float32)
    return out + b


def _ref_resblock(x, bn, conv, stride, padding):
    scale, shift = bn
    a = jnp.maximum(x.astype(jnp.float32) * scale + shift, 0.0)
    return _ref_conv(a, conv, stride, padding)


def _ref_down(x, p):
    identity = _q(_ref_conv(x, p['conv1'], 2, 0))
    out = _q(_ref_resblock(x, p['bn1'], p['c1'], 2, 0))
    out = _q(_ref_resblock(out, p['bn2'], p['c2'], 1, 1))
    out = _ref_resblock(out, p['bn3'], p['c3'], 1, 0) + identity.astype(jnp.float32)
    return _q(out)


def _ref_bottleneck(x, p):
    out = _q(_ref_resblock(x, p['bn1'], p['c1'], 1, 0))
    out = _q(_ref_resblock(out, p['bn2'], p['c2'], 1, 1))
    out = _ref_resblock(out, p['bn3'], p['c3'], 1, 0) + x.astype(jnp.float32)
    return _q(out)


def reference_forward(x_nchw, params):
    x = _q(jnp.transpose(x_nchw, (0, 2, 3, 1)))
    for kind, p in params:
        x = _ref_down(x, p) if kind == 'down' else _ref_bottleneck(x, p)
    return jnp.transpose(x, (0, 3, 1, 2))


# ---------------------------------------------------------------------------
# Main
# ---------------------------------------------------------------------------

if __name__ == "__main__":
    key = jax.random.PRNGKey(0)
    k_x, k_p = jax.random.split(key)

    in_ch, layer_list = 16, [32, 32]
    batch, spatial = 2, 16

    x_nchw = jax.random.normal(k_x, (batch, in_ch, spatial, spatial), jnp.float32)
    params = init_layer(k_p, in_ch, layer_list)

    fwd = jax.jit(lambda xx: layer_forward(xx, params))
    out = jax.block_until_ready(fwd(x_nchw))
    assert out.shape == (batch, layer_list[-1], spatial // 2, spatial // 2), out.shape

    ref_fwd = jax.jit(lambda xx: reference_forward(xx, params))
    ref = jax.block_until_ready(ref_fwd(x_nchw))

    max_err = float(jnp.max(jnp.abs(out.astype(jnp.float32) - ref.astype(jnp.float32))))
    if max_err < 5e-3:
        print("KERNEL_OK")
    else:
        print(f"MISMATCH max_abs_err={max_err}")
</pallas_src>

<mosaic_0001>
module attributes {stable_mosaic.version = 11 : i64} {
  func.func @_down_entry_kernel(%arg0: i32, %arg1: memref<64x16xf32, #tpu.memory_space<vmem>>, %arg2: memref<1x16xf32, #tpu.memory_space<vmem>>, %arg3: memref<1x16xf32, #tpu.memory_space<vmem>>, %arg4: memref<16x32xbf16, #tpu.memory_space<vmem>>, %arg5: memref<1x32xf32, #tpu.memory_space<vmem>>, %arg6: memref<16x8xbf16, #tpu.memory_space<vmem>>, %arg7: memref<1x8xf32, #tpu.memory_space<vmem>>, %arg8: memref<64x32xf32, #tpu.memory_space<vmem>>, %arg9: memref<64x8xf32, #tpu.memory_space<vmem>>) attributes {dimension_semantics = [#tpu.dimension_semantics<parallel>], iteration_bounds = array<i64: 2>, scalar_prefetch = 0 : i64, scratch_operands = 0 : i64, tpu.core_type = #tpu.core_type<tc>, window_params = [{transform_indices = @transform_0, window_bounds = array<i64: 64, 16>}, {pipeline_mode = #tpu.pipeline_mode<synchronous>, transform_indices = @transform_1, window_bounds = array<i64: 1, 16>}, {pipeline_mode = #tpu.pipeline_mode<synchronous>, transform_indices = @transform_2, window_bounds = array<i64: 1, 16>}, {pipeline_mode = #tpu.pipeline_mode<synchronous>, transform_indices = @transform_3, window_bounds = array<i64: 16, 32>}, {pipeline_mode = #tpu.pipeline_mode<synchronous>, transform_indices = @transform_4, window_bounds = array<i64: 1, 32>}, {pipeline_mode = #tpu.pipeline_mode<synchronous>, transform_indices = @transform_5, window_bounds = array<i64: 16, 8>}, {pipeline_mode = #tpu.pipeline_mode<synchronous>, transform_indices = @transform_6, window_bounds = array<i64: 1, 8>}, {transform_indices = @transform_7, window_bounds = array<i64: 64, 32>}, {transform_indices = @transform_8, window_bounds = array<i64: 64, 8>}]} {
    %c0 = arith.constant 0 : index
    %c0_0 = arith.constant 0 : index
    %0 = vector.load %arg1[%c0, %c0_0] : memref<64x16xf32, #tpu.memory_space<vmem>>, vector<64x16xf32>
    %1 = arith.truncf %0 : vector<64x16xf32> to vector<64x16xbf16>
    %c0_1 = arith.constant 0 : index
    %c0_2 = arith.constant 0 : index
    %2 = vector.load %arg4[%c0_1, %c0_2] : memref<16x32xbf16, #tpu.memory_space<vmem>>, vector<16x32xbf16>
    %cst = arith.constant dense<0.000000e+00> : vector<64x32xf32>
    %3 = tpu.matmul %1, %2, %cst {dimension_numbers = #tpu.dot_dimension_numbers<[1], [0], [0], [1], [0, 0, 1, 1], [], []>} : vector<64x16xbf16>, vector<16x32xbf16>, vector<64x32xf32> -> vector<64x32xf32>
    %c0_3 = arith.constant 0 : index
    %c0_4 = arith.constant 0 : index
    %4 = vector.load %arg5[%c0_3, %c0_4] : memref<1x32xf32, #tpu.memory_space<vmem>>, vector<1x32xf32>
    %5 = vector.broadcast %4 : vector<1x32xf32> to vector<64x32xf32>
    %6 = arith.addf %3, %5 : vector<64x32xf32>
    %c0_5 = arith.constant 0 : index
    %c0_6 = arith.constant 0 : index
    %7 = vector.load %arg8[%c0_5, %c0_6] : memref<64x32xf32, #tpu.memory_space<vmem>>, vector<64x32xf32>
    tpu.vector_store %arg8[%c0_5, %c0_6], %6 {strides = array<i32>} : memref<64x32xf32, #tpu.memory_space<vmem>>, vector<64x32xf32>,
    %c0_7 = arith.constant 0 : index
    %c0_8 = arith.constant 0 : index
    %8 = vector.load %arg2[%c0_7, %c0_8] : memref<1x16xf32, #tpu.memory_space<vmem>>, vector<1x16xf32>
    %9 = vector.broadcast %8 : vector<1x16xf32> to vector<64x16xf32>
    %10 = arith.mulf %0, %9 : vector<64x16xf32>
    %c0_9 = arith.constant 0 : index
    %c0_10 = arith.constant 0 : index
    %11 = vector.load %arg3[%c0_9, %c0_10] : memref<1x16xf32, #tpu.memory_space<vmem>>, vector<1x16xf32>
    %12 = vector.broadcast %11 : vector<1x16xf32> to vector<64x16xf32>
    %13 = arith.addf %10, %12 : vector<64x16xf32>
    %cst_11 = arith.constant 0.000000e+00 : f32
    %14 = vector.broadcast %cst_11 : f32 to vector<64x16xf32>
    %15 = arith.maximumf %13, %14 : vector<64x16xf32>
    %16 = arith.truncf %15 : vector<64x16xf32> to vector<64x16xbf16>
    %c0_12 = arith.constant 0 : index
    %c0_13 = arith.constant 0 : index
    %17 = vector.load %arg6[%c0_12, %c0_13] : memref<16x8xbf16, #tpu.memory_space<vmem>>, vector<16x8xbf16>
    %cst_14 = arith.constant dense<0.000000e+00> : vector<64x8xf32>
    %18 = tpu.matmul %16, %17, %cst_14 {dimension_numbers = #tpu.dot_dimension_numbers<[1], [0], [0], [1], [0, 0, 1, 1], [], []>} : vector<64x16xbf16>, vector<16x8xbf16>, vector<64x8xf32> -> vector<64x8xf32>
    %c0_15 = arith.constant 0 : index
    %c0_16 = arith.constant 0 : index
    %19 = vector.load %arg7[%c0_15, %c0_16] : memref<1x8xf32, #tpu.memory_space<vmem>>, vector<1x8xf32>
    %20 = vector.broadcast %19 : vector<1x8xf32> to vector<64x8xf32>
    %21 = arith.addf %18, %20 : vector<64x8xf32>
    %c0_17 = arith.constant 0 : index
    %c0_18 = arith.constant 0 : index
    %22 = vector.load %arg9[%c0_17, %c0_18] : memref<64x8xf32, #tpu.memory_space<vmem>>, vector<64x8xf32>
    tpu.vector_store %arg9[%c0_17, %c0_18], %21 {strides = array<i32>} : memref<64x8xf32, #tpu.memory_space<vmem>>, vector<64x8xf32>,
    return
  }
  func.func @transform_0(%arg0: i32) -> (i32, i32) {
    %c0_i32 = arith.constant 0 : i32
    %c0_i32_0 = arith.constant 0 : i32
    return %arg0, %c0_i32 : i32, i32
  }
  func.func @transform_1(%arg0: i32) -> (i32, i32) {
    %c0_i32 = arith.constant 0 : i32
    %c0_i32_0 = arith.constant 0 : i32
    %c0_i32_1 = arith.constant 0 : i32
    return %c0_i32, %c0_i32_0 : i32, i32
  }
  func.func @transform_2(%arg0: i32) -> (i32, i32) {
    %c0_i32 = arith.constant 0 : i32
    %c0_i32_0 = arith.constant 0 : i32
    %c0_i32_1 = arith.constant 0 : i32
    return %c0_i32, %c0_i32_0 : i32, i32
  }
  func.func @transform_3(%arg0: i32) -> (i32, i32) {
    %c0_i32 = arith.constant 0 : i32
    %c0_i32_0 = arith.constant 0 : i32
    %c0_i32_1 = arith.constant 0 : i32
    return %c0_i32, %c0_i32_0 : i32, i32
  }
  func.func @transform_4(%arg0: i32) -> (i32, i32) {
    %c0_i32 = arith.constant 0 : i32
    %c0_i32_0 = arith.constant 0 : i32
    %c0_i32_1 = arith.constant 0 : i32
    return %c0_i32, %c0_i32_0 : i32, i32
  }
  func.func @transform_5(%arg0: i32) -> (i32, i32) {
    %c0_i32 = arith.constant 0 : i32
    %c0_i32_0 = arith.constant 0 : i32
    %c0_i32_1 = arith.constant 0 : i32
    return %c0_i32, %c0_i32_0 : i32, i32
  }
  func.func @transform_6(%arg0: i32) -> (i32, i32) {
    %c0_i32 = arith.constant 0 : i32
    %c0_i32_0 = arith.constant 0 : i32
    %c0_i32_1 = arith.constant 0 : i32
    return %c0_i32, %c0_i32_0 : i32, i32
  }
  func.func @transform_7(%arg0: i32) -> (i32, i32) {
    %c0_i32 = arith.constant 0 : i32
    %c0_i32_0 = arith.constant 0 : i32
    return %arg0, %c0_i32 : i32, i32
  }
  func.func @transform_8(%arg0: i32) -> (i32, i32) {
    %c0_i32 = arith.constant 0 : i32
    %c0_i32_0 = arith.constant 0 : i32
    return %arg0, %c0_i32 : i32, i32
  }
}

module attributes {stable_mosaic.version = 11 : i64} {
  func.func @_conv3x3_kernel(%arg0: i32, %arg1: memref<1x64x8xf32, #tpu.memory_space<vmem>>, %arg2: memref<1x8xf32, #tpu.memory_space<vmem>>, %arg3: memref<1x8xf32, #tpu.memory_space<vmem>>, %arg4: memref<9x8x8xbf16, #tpu.memory_space<vmem>>, %arg5: memref<1x8xf32, #tpu.memory_space<vmem>>, %arg6: memref<64x1xbf16, #tpu.memory_space<vmem>>, %arg7: memref<64x1xbf16, #tpu.memory_space<vmem>>, %arg8: memref<1x64x8xf32, #tpu.memory_space<vmem>>, %arg9: memref<64x8xf32, #tpu.memory_space<vmem>>) attributes {dimension_semantics = [#tpu.dimension_semantics<parallel>], iteration_bounds = array<i64: 2>, scalar_prefetch = 0 : i64, scratch_operands = 1 : i64, tpu.core_type = #tpu.core_type<tc>, window_params = [{transform_indices = @transform_0, window_bounds = array<i64: 1, 64, 8>}, {pipeline_mode = #tpu.pipeline_mode<synchronous>, transform_indices = @transform_1, window_bounds = array<i64: 1, 8>}, {pipeline_mode = #tpu.pipeline_mode<synchronous>, transform_indices = @transform_2, window_bounds = array<i64: 1, 8>}, {pipeline_mode = #tpu.pipeline_mode<synchronous>, transform_indices = @transform_3, window_bounds = array<i64: 9, 8, 8>}, {pipeline_mode = #tpu.pipeline_mode<synchronous>, transform_indices = @transform_4, window_bounds = array<i64: 1, 8>}, {pipeline_mode = #tpu.pipeline_mode<synchronous>, transform_indices = @transform_5, window_bounds = array<i64: 64, 1>}, {pipeline_mode = #tpu.pipeline_mode<synchronous>, transform_indices = @transform_6, window_bounds = array<i64: 64, 1>}, {transform_indices = @transform_7, window_bounds = array<i64: 1, 64, 8>}]} {
    %c0 = arith.constant 0 : index
    %c0_0 = arith.constant 0 : index
    %c0_1 = arith.constant 0 : index
    %0 = vector.load %arg1[%c0, %c0_0, %c0_1] : memref<1x64x8xf32, #tpu.memory_space<vmem>>, vector<1x64x8xf32>
    %1 = vector.shape_cast %0 : vector<1x64x8xf32> to vector<64x8xf32>
    %c0_2 = arith.constant 0 : index
    %c0_3 = arith.constant 0 : index
    %2 = vector.load %arg2[%c0_2, %c0_3] : memref<1x8xf32, #tpu.memory_space<vmem>>, vector<1x8xf32>
    %3 = vector.broadcast %2 : vector<1x8xf32> to vector<64x8xf32>
    %4 = arith.mulf %1, %3 : vector<64x8xf32>
    %c0_4 = arith.constant 0 : index
    %c0_5 = arith.constant 0 : index
    %5 = vector.load %arg3[%c0_4, %c0_5] : memref<1x8xf32, #tpu.memory_space<vmem>>, vector<1x8xf32>
    %6 = vector.broadcast %5 : vector<1x8xf32> to vector<64x8xf32>
    %7 = arith.addf %4, %6 : vector<64x8xf32>
    %cst = arith.constant 0.000000e+00 : f32
    %8 = vector.broadcast %cst : f32 to vector<64x8xf32>
    %9 = arith.maximumf %7, %8 : vector<64x8xf32>
    %10 = arith.truncf %9 : vector<64x8xf32> to vector<64x8xbf16>
    %c0_6 = arith.constant 0 : index
    %c0_7 = arith.constant 0 : index
    %11 = vector.load %arg6[%c0_6, %c0_7] : memref<64x1xbf16, #tpu.memory_space<vmem>>, vector<64x1xbf16>
    %12 = vector.broadcast %11 : vector<64x1xbf16> to vector<64x8xbf16>
    %13 = arith.mulf %10, %12 : vector<64x8xbf16>
    %c0_8 = arith.constant 0 : index
    %c0_9 = arith.constant 0 : index
    %14 = vector.load %arg7[%c0_8, %c0_9] : memref<64x1xbf16, #tpu.memory_space<vmem>>, vector<64x1xbf16>
    %15 = vector.broadcast %14 : vector<64x1xbf16> to vector<64x8xbf16>
    %16 = arith.mulf %10, %15 : vector<64x8xbf16>
    %cst_10 = arith.constant 0.000000e+00 : f32
    %17 = vector.broadcast %cst_10 : f32 to vector<64x8xf32>
    %c0_11 = arith.constant 0 : index
    %c0_12 = arith.constant 0 : index
    %18 = vector.load %arg9[%c0_11, %c0_12] : memref<64x8xf32, #tpu.memory_space<vmem>>, vector<64x8xf32>
    tpu.vector_store %arg9[%c0_11, %c0_12], %17 {strides = array<i32>} : memref<64x8xf32, #tpu.memory_space<vmem>>, vector<64x8xf32>,
    %c0_13 = arith.constant 0 : index
    %c0_14 = arith.constant 0 : index
    %c0_15 = arith.constant 0 : index
    %19 = vector.load %arg4[%c0_13, %c0_14, %c0_15] : memref<9x8x8xbf16, #tpu.memory_space<vmem>>, vector<1x8x8xbf16>
    %20 = vector.shape_cast %19 : vector<1x8x8xbf16> to vector<8x8xbf16>
    %cst_16 = arith.constant dense<0.000000e+00> : vector<64x8xf32>
    %21 = tpu.matmul %13, %20, %cst_16 {dimension_numbers = #tpu.dot_dimension_numbers<[1], [0], [0], [1], [0, 0, 1, 1], [], []>} : vector<64x8xbf16>, vector<8x8xbf16>, vector<64x8xf32> -> vector<64x8xf32>
    %c9 = arith.constant 9 : index
    %c0_17 = arith.constant 0 : index
    %22 = vector.load %arg9[%c9, %c0_17] : memref<64x8xf32, #tpu.memory_space<vmem>>, vector<55x8xf32>
    %23 = vector.extract_strided_slice %21 {offsets = [0, 0], sizes = [55, 8], strides = [1, 1]} : vector<64x8xf32> to vector<55x8xf32>
    %24 = arith.addf %22, %23 : vector<55x8xf32>
    %c9_18 = arith.constant 9 : index
    %c0_19 = arith.constant 0 : index
    %25 = vector.load %arg9[%c9_18, %c0_19] : memref<64x8xf32, #tpu.memory_space<vmem>>, vector<55x8xf32>
    tpu.vector_store %arg9[%c9_18, %c0_19], %24 {strides = array<i32>} : memref<64x8xf32, #tpu.memory_space<vmem>>, vector<55x8xf32>,
    %c1 = arith.constant 1 : index
    %c0_20 = arith.constant 0 : index
    %c0_21 = arith.constant 0 : index
    %26 = vector.load %arg4[%c1, %c0_20, %c0_21] : memref<9x8x8xbf16, #tpu.memory_space<vmem>>, vector<1x8x8xbf16>
    %27 = vector.shape_cast %26 : vector<1x8x8xbf16> to vector<8x8xbf16>
    %cst_22 = arith.constant dense<0.000000e+00> : vector<64x8xf32>
    %28 = tpu.matmul %10, %27, %cst_22 {dimension_numbers = #tpu.dot_dimension_numbers<[1], [0], [0], [1], [0, 0, 1, 1], [], []>} : vector<64x8xbf16>, vector<8x8xbf16>, vector<64x8xf32> -> vector<64x8xf32>
    %c8 = arith.constant 8 : index
    %c0_23 = arith.constant 0 : index
    %29 = vector.load %arg9[%c8, %c0_23] : memref<64x8xf32, #tpu.memory_space<vmem>>, vector<56x8xf32>
    %30 = vector.extract_strided_slice %28 {offsets = [0, 0], sizes = [56, 8], strides = [1, 1]} : vector<64x8xf32> to vector<56x8xf32>
    %31 = arith.addf %29, %30 : vector<56x8xf32>
    %c8_24 = arith.constant 8 : index
    %c0_25 = arith.constant 0 : index
    %32 = vector.load %arg9[%c8_24, %c0_25] : memref<64x8xf32, #tpu.memory_space<vmem>>, vector<56x8xf32>
    tpu.vector_store %arg9[%c8_24, %c0_25], %31 {strides = array<i32>} : memref<64x8xf32, #tpu.memory_space<vmem>>, vector<56x8xf32>,
    %c2 = arith.constant 2 : index
    %c0_26 = arith.constant 0 : index
    %c0_27 = arith.constant 0 : index
    %33 = vector.load %arg4[%c2, %c0_26, %c0_27] : memref<9x8x8xbf16, #tpu.memory_space<vmem>>, vector<1x8x8xbf16>
    %34 = vector.shape_cast %33 : vector<1x8x8xbf16> to vector<8x8xbf16>
    %cst_28 = arith.constant dense<0.000000e+00> : vector<64x8xf32>
    %35 = tpu.matmul %16, %34, %cst_28 {dimension_numbers = #tpu.dot_dimension_numbers<[1], [0], [0], [1], [0, 0, 1, 1], [], []>} : vector<64x8xbf16>, vector<8x8xbf16>, vector<64x8xf32> -> vector<64x8xf32>
    %c7 = arith.constant 7 : index
    %c0_29 = arith.constant 0 : index
    %36 = vector.load %arg9[%c7, %c0_29] : memref<64x8xf32, #tpu.memory_space<vmem>>, vector<57x8xf32>
    %37 = vector.extract_strided_slice %35 {offsets = [0, 0], sizes = [57, 8], strides = [1, 1]} : vector<64x8xf32> to vector<57x8xf32>
    %38 = arith.addf %36, %37 : vector<57x8xf32>
    %c7_30 = arith.constant 7 : index
    %c0_31 = arith.constant 0 : index
    %39 = vector.load %arg9[%c7_30, %c0_31] : memref<64x8xf32, #tpu.memory_space<vmem>>, vector<57x8xf32>
    tpu.vector_store %arg9[%c7_30, %c0_31], %38 {strides = array<i32>} : memref<64x8xf32, #tpu.memory_space<vmem>>, vector<57x8xf32>,
    %c3 = arith.constant 3 : index
    %c0_32 = arith.constant 0 : index
    %c0_33 = arith.constant 0 : index
    %40 = vector.load %arg4[%c3, %c0_32, %c0_33] : memref<9x8x8xbf16, #tpu.memory_space<vmem>>, vector<1x8x8xbf16>
    %41 = vector.shape_cast %40 : vector<1x8x8xbf16> to vector<8x8xbf16>
    %cst_34 = arith.constant dense<0.000000e+00> : vector<64x8xf32>
    %42 = tpu.matmul %13, %41, %cst_34 {dimension_numbers = #tpu.dot_dimension_numbers<[1], [0], [0], [1], [0, 0, 1, 1], [], []>} : vector<64x8xbf16>, vector<8x8xbf16>, vector<64x8xf32> -> vector<64x8xf32>
    %c1_35 = arith.constant 1 : index
    %c0_36 = arith.constant 0 : index
    %43 = vector.load %arg9[%c1_35, %c0_36] : memref<64x8xf32, #tpu.memory_space<vmem>>, vector<63x8xf32>
    %44 = vector.extract_strided_slice %42 {offsets = [0, 0], sizes = [63, 8], strides = [1, 1]} : vector<64x8xf32> to vector<63x8xf32>
    %45 = arith.addf %43, %44 : vector<63x8xf32>
    %c1_37 = arith.constant 1 : index
    %c0_38 = arith.constant 0 : index
    %46 = vector.load %arg9[%c1_37, %c0_38] : memref<64x8xf32, #tpu.memory_space<vmem>>, vector<63x8xf32>
    tpu.vector_store %arg9[%c1_37, %c0_38], %45 {strides = array<i32>} : memref<64x8xf32, #tpu.memory_space<vmem>>, vector<63x8xf32>,
    %c4 = arith.constant 4 : index
    %c0_39 = arith.constant 0 : index
    %c0_40 = arith.constant 0 : index
    %47 = vector.load %arg4[%c4, %c0_39, %c0_40] : memref<9x8x8xbf16, #tpu.memory_space<vmem>>, vector<1x8x8xbf16>
    %48 = vector.shape_cast %47 : vector<1x8x8xbf16> to vector<8x8xbf16>
    %cst_41 = arith.constant dense<0.000000e+00> : vector<64x8xf32>
    %49 = tpu.matmul %10, %48, %cst_41 {dimension_numbers = #tpu.dot_dimension_numbers<[1], [0], [0], [1], [0, 0, 1, 1], [], []>} : vector<64x8xbf16>, vector<8x8xbf16>, vector<64x8xf32> -> vector<64x8xf32>
    %c0_42 = arith.constant 0 : index
    %c0_43 = arith.constant 0 : index
    %50 = vector.load %arg9[%c0_42, %c0_43] : memref<64x8xf32, #tpu.memory_space<vmem>>, vector<64x8xf32>
    %51 = arith.addf %50, %49 : vector<64x8xf32>
    %c0_44 = arith.constant 0 : index
    %c0_45 = arith.constant 0 : index
    %52 = vector.load %arg9[%c0_44, %c0_45] : memref<64x8xf32, #tpu.memory_space<vmem>>, vector<64x8xf32>
    tpu.vector_store %arg9[%c0_44, %c0_45], %51 {strides = array<i32>} : memref<64x8xf32, #tpu.memory_space<vmem>>, vector<64x8xf32>,
    %c5 = arith.constant 5 : index
    %c0_46 = arith.constant 0 : index
    %c0_47 = arith.constant 0 : index
    %53 = vector.load %arg4[%c5, %c0_46, %c0_47] : memref<9x8x8xbf16, #tpu.memory_space<vmem>>, vector<1x8x8xbf16>
    %54 = vector.shape_cast %53 : vector<1x8x8xbf16> to vector<8x8xbf16>
    %cst_48 = arith.constant dense<0.000000e+00> : vector<64x8xf32>
    %55 = tpu.matmul %16, %54, %cst_48 {dimension_numbers = #tpu.dot_dimension_numbers<[1], [0], [0], [1], [0, 0, 1, 1], [], []>} : vector<64x8xbf16>, vector<8x8xbf16>, vector<64x8xf32> -> vector<64x8xf32>
    %c0_49 = arith.constant 0 : index
    %c0_50 = arith.constant 0 : index
    %56 = vector.load %arg9[%c0_49, %c0_50] : memref<64x8xf32, #tpu.memory_space<vmem>>, vector<63x8xf32>
    %57 = vector.extract_strided_slice %55 {offsets = [1, 0], sizes = [63, 8], strides = [1, 1]} : vector<64x8xf32> to vector<63x8xf32>
    %58 = arith.addf %56, %57 : vector<63x8xf32>
    %c0_51 = arith.constant 0 : index
    %c0_52 = arith.constant 0 : index
    %59 = vector.load %arg9[%c0_51, %c0_52] : memref<64x8xf32, #tpu.memory_space<vmem>>, vector<63x8xf32>
    tpu.vector_store %arg9[%c0_51, %c0_52], %58 {strides = array<i32>} : memref<64x8xf32, #tpu.memory_space<vmem>>, vector<63x8xf32>,
    %c6 = arith.constant 6 : index
    %c0_53 = arith.constant 0 : index
    %c0_54 = arith.constant 0 : index
    %60 = vector.load %arg4[%c6, %c0_53, %c0_54] : memref<9x8x8xbf16, #tpu.memory_space<vmem>>, vector<1x8x8xbf16>
    %61 = vector.shape_cast %60 : vector<1x8x8xbf16> to vector<8x8xbf16>
    %cst_55 = arith.constant dense<0.000000e+00> : vector<64x8xf32>
    %62 = tpu.matmul %13, %61, %cst_55 {dimension_numbers = #tpu.dot_dimension_numbers<[1], [0], [0], [1], [0, 0, 1, 1], [], []>} : vector<64x8xbf16>, vector<8x8xbf16>, vector<64x8xf32> -> vector<64x8xf32>
    %c0_56 = arith.constant 0 : index
    %c0_57 = arith.constant 0 : index
    %63 = vector.load %arg9[%c0_56, %c0_57] : memref<64x8xf32, #tpu.memory_space<vmem>>, vector<57x8xf32>
    %64 = vector.extract_strided_slice %62 {offsets = [7, 0], sizes = [57, 8], strides = [1, 1]} : vector<64x8xf32> to vector<57x8xf32>
    %65 = arith.addf %63, %64 : vector<57x8xf32>
    %c0_58 = arith.constant 0 : index
    %c0_59 = arith.constant 0 : index
    %66 = vector.load %arg9[%c0_58, %c0_59] : memref<64x8xf32, #tpu.memory_space<vmem>>, vector<57x8xf32>
    tpu.vector_store %arg9[%c0_58, %c0_59], %65 {strides = array<i32>} : memref<64x8xf32, #tpu.memory_space<vmem>>, vector<57x8xf32>,
    %c7_60 = arith.constant 7 : index
    %c0_61 = arith.constant 0 : index
    %c0_62 = arith.constant 0 : index
    %67 = vector.load %arg4[%c7_60, %c0_61, %c0_62] : memref<9x8x8xbf16, #tpu.memory_space<vmem>>, vector<1x8x8xbf16>
    %68 = vector.shape_cast %67 : vector<1x8x8xbf16> to vector<8x8xbf16>
    %cst_63 = arith.constant dense<0.000000e+00> : vector<64x8xf32>
    %69 = tpu.matmul %10, %68, %cst_63 {dimension_numbers = #tpu.dot_dimension_numbers<[1], [0], [0], [1], [0, 0, 1, 1], [], []>} : vector<64x8xbf16>, vector<8x8xbf16>, vector<64x8xf32> -> vector<64x8xf32>
    %c0_64 = arith.constant 0 : index
    %c0_65 = arith.constant 0 : index
    %70 = vector.load %arg9[%c0_64, %c0_65] : memref<64x8xf32, #tpu.memory_space<vmem>>, vector<56x8xf32>
    %71 = vector.extract_strided_slice %69 {offsets = [8, 0], sizes = [56, 8], strides = [1, 1]} : vector<64x8xf32> to vector<56x8xf32>
    %72 = arith.addf %70, %71 : vector<56x8xf32>
    %c0_66 = arith.constant 0 : index
    %c0_67 = arith.constant 0 : index
    %73 = vector.load %arg9[%c0_66, %c0_67] : memref<64x8xf32, #tpu.memory_space<vmem>>, vector<56x8xf32>
    tpu.vector_store %arg9[%c0_66, %c0_67], %72 {strides = array<i32>} : memref<64x8xf32, #tpu.memory_space<vmem>>, vector<56x8xf32>,
    %c8_68 = arith.constant 8 : index
    %c0_69 = arith.constant 0 : index
    %c0_70 = arith.constant 0 : index
    %74 = vector.load %arg4[%c8_68, %c0_69, %c0_70] : memref<9x8x8xbf16, #tpu.memory_space<vmem>>, vector<1x8x8xbf16>
    %75 = vector.shape_cast %74 : vector<1x8x8xbf16> to vector<8x8xbf16>
    %cst_71 = arith.constant dense<0.000000e+00> : vector<64x8xf32>
    %76 = tpu.matmul %16, %75, %cst_71 {dimension_numbers = #tpu.dot_dimension_numbers<[1], [0], [0], [1], [0, 0, 1, 1], [], []>} : vector<64x8xbf16>, vector<8x8xbf16>, vector<64x8xf32> -> vector<64x8xf32>
    %c0_72 = arith.constant 0 : index
    %c0_73 = arith.constant 0 : index
    %77 = vector.load %arg9[%c0_72, %c0_73] : memref<64x8xf32, #tpu.memory_space<vmem>>, vector<55x8xf32>
    %78 = vector.extract_strided_slice %76 {offsets = [9, 0], sizes = [55, 8], strides = [1, 1]} : vector<64x8xf32> to vector<55x8xf32>
    %79 = arith.addf %77, %78 : vector<55x8xf32>
    %c0_74 = arith.constant 0 : index
    %c0_75 = arith.constant 0 : index
    %80 = vector.load %arg9[%c0_74, %c0_75] : memref<64x8xf32, #tpu.memory_space<vmem>>, vector<55x8xf32>
    tpu.vector_store %arg9[%c0_74, %c0_75], %79 {strides = array<i32>} : memref<64x8xf32, #tpu.memory_space<vmem>>, vector<55x8xf32>,
    %c0_76 = arith.constant 0 : index
    %c0_77 = arith.constant 0 : index
    %81 = vector.load %arg9[%c0_76, %c0_77] : memref<64x8xf32, #tpu.memory_space<vmem>>, vector<64x8xf32>
    %c0_78 = arith.constant 0 : index
    %c0_79 = arith.constant 0 : index
    %82 = vector.load %arg5[%c0_78, %c0_79] : memref<1x8xf32, #tpu.memory_space<vmem>>, vector<1x8xf32>
    %83 = vector.broadcast %82 : vector<1x8xf32> to vector<64x8xf32>
    %84 = arith.addf %81, %83 : vector<64x8xf32>
    %c0_80 = arith.constant 0 : index
    %c0_81 = arith.constant 0 : index
    %c0_82 = arith.constant 0 : index
    %85 = vector.load %arg8[%c0_80, %c0_81, %c0_82] : memref<1x64x8xf32, #tpu.memory_space<vmem>>, vector<1x64x8xf32>
    %86 = vector.shape_cast %85 : vector<1x64x8xf32> to vector<64x8xf32>
    %87 = vector.shape_cast %84 : vector<64x8xf32> to vector<1x64x8xf32>
    tpu.vector_store %arg8[%c0_80, %c0_81, %c0_82], %87 {strides = array<i32>} : memref<1x64x8xf32, #tpu.memory_space<vmem>>, vector<1x64x8xf32>,
    return
  }
  func.func @transform_0(%arg0: i32) -> (i32, i32, i32) {
    %c0_i32 = arith.constant 0 : i32
    %c0_i32_0 = arith.constant 0 : i32
    %c0_i32_1 = arith.constant 0 : i32
    return %arg0, %c0_i32, %c0_i32_0 : i32, i32, i32
  }
  func.func @transform_1(%arg0: i32) -> (i32, i32) {
    %c0_i32 = arith.constant 0 : i32
    %c0_i32_0 = arith.constant 0 : i32
    %c0_i32_1 = arith.constant 0 : i32
    return %c0_i32, %c0_i32_0 : i32, i32
  }
  func.func @transform_2(%arg0: i32) -> (i32, i32) {
    %c0_i32 = arith.constant 0 : i32
    %c0_i32_0 = arith.constant 0 : i32
    %c0_i32_1 = arith.constant 0 : i32
    return %c0_i32, %c0_i32_0 : i32, i32
  }
  func.func @transform_3(%arg0: i32) -> (i32, i32, i32) {
    %c0_i32 = arith.constant 0 : i32
    %c0_i32_0 = arith.constant 0 : i32
    %c0_i32_1 = arith.constant 0 : i32
    %c0_i32_2 = arith.constant 0 : i32
    return %c0_i32, %c0_i32_0, %c0_i32_1 : i32, i32, i32
  }
  func.func @transform_4(%arg0: i32) -> (i32, i32) {
    %c0_i32 = arith.constant 0 : i32
    %c0_i32_0 = arith.constant 0 : i32
    %c0_i32_1 = arith.constant 0 : i32
    return %c0_i32, %c0_i32_0 : i32, i32
  }
  func.func @transform_5(%arg0: i32) -> (i32, i32) {
    %c0_i32 = arith.constant 0 : i32
    %c0_i32_0 = arith.constant 0 : i32
    %c0_i32_1 = arith.constant 0 : i32
    return %c0_i32, %c0_i32_0 : i32, i32
  }
  func.func @transform_6(%arg0: i32) -> (i32, i32) {
    %c0_i32 = arith.constant 0 : i32
    %c0_i32_0 = arith.constant 0 : i32
    %c0_i32_1 = arith.constant 0 : i32
    return %c0_i32, %c0_i32_0 : i32, i32
  }
  func.func @transform_7(%arg0: i32) -> (i32, i32, i32) {
    %c0_i32 = arith.constant 0 : i32
    %c0_i32_0 = arith.constant 0 : i32
    %c0_i32_1 = arith.constant 0 : i32
    return %arg0, %c0_i32, %c0_i32_0 : i32, i32, i32
  }
}

module attributes {stable_mosaic.version = 11 : i64} {
  func.func @kernel(%arg0: i32, %arg1: memref<64x8xf32, #tpu.memory_space<vmem>>, %arg2: memref<1x8xf32, #tpu.memory_space<vmem>>, %arg3: memref<1x8xf32, #tpu.memory_space<vmem>>, %arg4: memref<8x32xbf16, #tpu.memory_space<vmem>>, %arg5: memref<1x32xf32, #tpu.memory_space<vmem>>, %arg6: memref<64x32xf32, #tpu.memory_space<vmem>>, %arg7: memref<64x32xf32, #tpu.memory_space<vmem>>) attributes {dimension_semantics = [#tpu.dimension_semantics<parallel>], iteration_bounds = array<i64: 2>, scalar_prefetch = 0 : i64, scratch_operands = 0 : i64, tpu.core_type = #tpu.core_type<tc>, window_params = [{transform_indices = @transform_0, window_bounds = array<i64: 64, 8>}, {pipeline_mode = #tpu.pipeline_mode<synchronous>, transform_indices = @transform_1, window_bounds = array<i64: 1, 8>}, {pipeline_mode = #tpu.pipeline_mode<synchronous>, transform_indices = @transform_2, window_bounds = array<i64: 1, 8>}, {pipeline_mode = #tpu.pipeline_mode<synchronous>, transform_indices = @transform_3, window_bounds = array<i64: 8, 32>}, {pipeline_mode = #tpu.pipeline_mode<synchronous>, transform_indices = @transform_4, window_bounds = array<i64: 1, 32>}, {transform_indices = @transform_5, window_bounds = array<i64: 64, 32>}, {transform_indices = @transform_6, window_bounds = array<i64: 64, 32>}]} {
    %c0 = arith.constant 0 : index
    %c0_0 = arith.constant 0 : index
    %0 = vector.load %arg1[%c0, %c0_0] : memref<64x8xf32, #tpu.memory_space<vmem>>, vector<64x8xf32>
    %c0_1 = arith.constant 0 : index
    %c0_2 = arith.constant 0 : index
    %1 = vector.load %arg2[%c0_1, %c0_2] : memref<1x8xf32, #tpu.memory_space<vmem>>, vector<1x8xf32>
    %2 = vector.broadcast %1 : vector<1x8xf32> to vector<64x8xf32>
    %3 = arith.mulf %0, %2 : vector<64x8xf32>
    %c0_3 = arith.constant 0 : index
    %c0_4 = arith.constant 0 : index
    %4 = vector.load %arg3[%c0_3, %c0_4] : memref<1x8xf32, #tpu.memory_space<vmem>>, vector<1x8xf32>
    %5 = vector.broadcast %4 : vector<1x8xf32> to vector<64x8xf32>
    %6 = arith.addf %3, %5 : vector<64x8xf32>
    %cst = arith.constant 0.000000e+00 : f32
    %7 = vector.broadcast %cst : f32 to vector<64x8xf32>
    %8 = arith.maximumf %6, %7 : vector<64x8xf32>
    %9 = arith.truncf %8 : vector<64x8xf32> to vector<64x8xbf16>
    %c0_5 = arith.constant 0 : index
    %c0_6 = arith.constant 0 : index
    %10 = vector.load %arg4[%c0_5, %c0_6] : memref<8x32xbf16, #tpu.memory_space<vmem>>, vector<8x32xbf16>
    %cst_7 = arith.constant dense<0.000000e+00> : vector<64x32xf32>
    %11 = tpu.matmul %9, %10, %cst_7 {dimension_numbers = #tpu.dot_dimension_numbers<[1], [0], [0], [1], [0, 0, 1, 1], [], []>} : vector<64x8xbf16>, vector<8x32xbf16>, vector<64x32xf32> -> vector<64x32xf32>
    %c0_8 = arith.constant 0 : index
    %c0_9 = arith.constant 0 : index
    %12 = vector.load %arg5[%c0_8, %c0_9] : memref<1x32xf32, #tpu.memory_space<vmem>>, vector<1x32xf32>
    %13 = vector.broadcast %12 : vector<1x32xf32> to vector<64x32xf32>
    %14 = arith.addf %11, %13 : vector<64x32xf32>
    %c0_10 = arith.constant 0 : index
    %c0_11 = arith.constant 0 : index
    %15 = vector.load %arg6[%c0_10, %c0_11] : memref<64x32xf32, #tpu.memory_space<vmem>>, vector<64x32xf32>
    %16 = arith.addf %14, %15 : vector<64x32xf32>
    %c0_12 = arith.constant 0 : index
    %c0_13 = arith.constant 0 : index
    %17 = vector.load %arg7[%c0_12, %c0_13] : memref<64x32xf32, #tpu.memory_space<vmem>>, vector<64x32xf32>
    tpu.vector_store %arg7[%c0_12, %c0_13], %16 {strides = array<i32>} : memref<64x32xf32, #tpu.memory_space<vmem>>, vector<64x32xf32>,
    return
  }
  func.func @transform_0(%arg0: i32) -> (i32, i32) {
    %c0_i32 = arith.constant 0 : i32
    %c0_i32_0 = arith.constant 0 : i32
    return %arg0, %c0_i32 : i32, i32
  }
  func.func @transform_1(%arg0: i32) -> (i32, i32) {
    %c0_i32 = arith.constant 0 : i32
    %c0_i32_0 = arith.constant 0 : i32
    %c0_i32_1 = arith.constant 0 : i32
    return %c0_i32, %c0_i32_0 : i32, i32
  }
  func.func @transform_2(%arg0: i32) -> (i32, i32) {
    %c0_i32 = arith.constant 0 : i32
    %c0_i32_0 = arith.constant 0 : i32
    %c0_i32_1 = arith.constant 0 : i32
    return %c0_i32, %c0_i32_0 : i32, i32
  }
  func.func @transform_3(%arg0: i32) -> (i32, i32) {
    %c0_i32 = arith.constant 0 : i32
    %c0_i32_0 = arith.constant 0 : i32
    %c0_i32_1 = arith.constant 0 : i32
    return %c0_i32, %c0_i32_0 : i32, i32
  }
  func.func @transform_4(%arg0: i32) -> (i32, i32) {
    %c0_i32 = arith.constant 0 : i32
    %c0_i32_0 = arith.constant 0 : i32
    %c0_i32_1 = arith.constant 0 : i32
    return %c0_i32, %c0_i32_0 : i32, i32
  }
  func.func @transform_5(%arg0: i32) -> (i32, i32) {
    %c0_i32 = arith.constant 0 : i32
    %c0_i32_0 = arith.constant 0 : i32
    return %arg0, %c0_i32 : i32, i32
  }
  func.func @transform_6(%arg0: i32) -> (i32, i32) {
    %c0_i32 = arith.constant 0 : i32
    %c0_i32_0 = arith.constant 0 : i32
    return %arg0, %c0_i32 : i32, i32
  }
}

module attributes {stable_mosaic.version = 11 : i64} {
  func.func @kernel(%arg0: i32, %arg1: memref<64x32xf32, #tpu.memory_space<vmem>>, %arg2: memref<1x32xf32, #tpu.memory_space<vmem>>, %arg3: memref<1x32xf32, #tpu.memory_space<vmem>>, %arg4: memref<32x8xbf16, #tpu.memory_space<vmem>>, %arg5: memref<1x8xf32, #tpu.memory_space<vmem>>, %arg6: memref<64x8xf32, #tpu.memory_space<vmem>>) attributes {dimension_semantics = [#tpu.dimension_semantics<parallel>], iteration_bounds = array<i64: 2>, scalar_prefetch = 0 : i64, scratch_operands = 0 : i64, tpu.core_type = #tpu.core_type<tc>, window_params = [{transform_indices = @transform_0, window_bounds = array<i64: 64, 32>}, {pipeline_mode = #tpu.pipeline_mode<synchronous>, transform_indices = @transform_1, window_bounds = array<i64: 1, 32>}, {pipeline_mode = #tpu.pipeline_mode<synchronous>, transform_indices = @transform_2, window_bounds = array<i64: 1, 32>}, {pipeline_mode = #tpu.pipeline_mode<synchronous>, transform_indices = @transform_3, window_bounds = array<i64: 32, 8>}, {pipeline_mode = #tpu.pipeline_mode<synchronous>, transform_indices = @transform_4, window_bounds = array<i64: 1, 8>}, {transform_indices = @transform_5, window_bounds = array<i64: 64, 8>}]} {
    %c0 = arith.constant 0 : index
    %c0_0 = arith.constant 0 : index
    %0 = vector.load %arg1[%c0, %c0_0] : memref<64x32xf32, #tpu.memory_space<vmem>>, vector<64x32xf32>
    %c0_1 = arith.constant 0 : index
    %c0_2 = arith.constant 0 : index
    %1 = vector.load %arg2[%c0_1, %c0_2] : memref<1x32xf32, #tpu.memory_space<vmem>>, vector<1x32xf32>
    %2 = vector.broadcast %1 : vector<1x32xf32> to vector<64x32xf32>
    %3 = arith.mulf %0, %2 : vector<64x32xf32>
    %c0_3 = arith.constant 0 : index
    %c0_4 = arith.constant 0 : index
    %4 = vector.load %arg3[%c0_3, %c0_4] : memref<1x32xf32, #tpu.memory_space<vmem>>, vector<1x32xf32>
    %5 = vector.broadcast %4 : vector<1x32xf32> to vector<64x32xf32>
    %6 = arith.addf %3, %5 : vector<64x32xf32>
    %cst = arith.constant 0.000000e+00 : f32
    %7 = vector.broadcast %cst : f32 to vector<64x32xf32>
    %8 = arith.maximumf %6, %7 : vector<64x32xf32>
    %9 = arith.truncf %8 : vector<64x32xf32> to vector<64x32xbf16>
    %c0_5 = arith.constant 0 : index
    %c0_6 = arith.constant 0 : index
    %10 = vector.load %arg4[%c0_5, %c0_6] : memref<32x8xbf16, #tpu.memory_space<vmem>>, vector<32x8xbf16>
    %cst_7 = arith.constant dense<0.000000e+00> : vector<64x8xf32>
    %11 = tpu.matmul %9, %10, %cst_7 {dimension_numbers = #tpu.dot_dimension_numbers<[1], [0], [0], [1], [0, 0, 1, 1], [], []>} : vector<64x32xbf16>, vector<32x8xbf16>, vector<64x8xf32> -> vector<64x8xf32>
    %c0_8 = arith.constant 0 : index
    %c0_9 = arith.constant 0 : index
    %12 = vector.load %arg5[%c0_8, %c0_9] : memref<1x8xf32, #tpu.memory_space<vmem>>, vector<1x8xf32>
    %13 = vector.broadcast %12 : vector<1x8xf32> to vector<64x8xf32>
    %14 = arith.addf %11, %13 : vector<64x8xf32>
    %c0_10 = arith.constant 0 : index
    %c0_11 = arith.constant 0 : index
    %15 = vector.load %arg6[%c0_10, %c0_11] : memref<64x8xf32, #tpu.memory_space<vmem>>, vector<64x8xf32>
    tpu.vector_store %arg6[%c0_10, %c0_11], %14 {strides = array<i32>} : memref<64x8xf32, #tpu.memory_space<vmem>>, vector<64x8xf32>,
    return
  }
  func.func @transform_0(%arg0: i32) -> (i32, i32) {
    %c0_i32 = arith.constant 0 : i32
    %c0_i32_0 = arith.constant 0 : i32
    return %arg0, %c0_i32 : i32, i32
  }
  func.func @transform_1(%arg0: i32) -> (i32, i32) {
    %c0_i32 = arith.constant 0 : i32
    %c0_i32_0 = arith.constant 0 : i32
    %c0_i32_1 = arith.constant 0 : i32
    return %c0_i32, %c0_i32_0 : i32, i32
  }
  func.func @transform_2(%arg0: i32) -> (i32, i32) {
    %c0_i32 = arith.constant 0 : i32
    %c0_i32_0 = arith.constant 0 : i32
    %c0_i32_1 = arith.constant 0 : i32
    return %c0_i32, %c0_i32_0 : i32, i32
  }
  func.func @transform_3(%arg0: i32) -> (i32, i32) {
    %c0_i32 = arith.constant 0 : i32
    %c0_i32_0 = arith.constant 0 : i32
    %c0_i32_1 = arith.constant 0 : i32
    return %c0_i32, %c0_i32_0 : i32, i32
  }
  func.func @transform_4(%arg0: i32) -> (i32, i32) {
    %c0_i32 = arith.constant 0 : i32
    %c0_i32_0 = arith.constant 0 : i32
    %c0_i32_1 = arith.constant 0 : i32
    return %c0_i32, %c0_i32_0 : i32, i32
  }
  func.func @transform_5(%arg0: i32) -> (i32, i32) {
    %c0_i32 = arith.constant 0 : i32
    %c0_i32_0 = arith.constant 0 : i32
    return %arg0, %c0_i32 : i32, i32
  }
}

module attributes {stable_mosaic.version = 11 : i64} {
  func.func @kernel(%arg0: i32, %arg1: memref<64x8xf32, #tpu.memory_space<vmem>>, %arg2: memref<1x8xf32, #tpu.memory_space<vmem>>, %arg3: memref<1x8xf32, #tpu.memory_space<vmem>>, %arg4: memref<8x32xbf16, #tpu.memory_space<vmem>>, %arg5: memref<1x32xf32, #tpu.memory_space<vmem>>, %arg6: memref<64x32xf32, #tpu.memory_space<vmem>>, %arg7: memref<64x32xf32, #tpu.memory_space<vmem>>) attributes {dimension_semantics = [#tpu.dimension_semantics<parallel>], iteration_bounds = array<i64: 2>, scalar_prefetch = 0 : i64, scratch_operands = 0 : i64, tpu.core_type = #tpu.core_type<tc>, window_params = [{transform_indices = @transform_0, window_bounds = array<i64: 64, 8>}, {pipeline_mode = #tpu.pipeline_mode<synchronous>, transform_indices = @transform_1, window_bounds = array<i64: 1, 8>}, {pipeline_mode = #tpu.pipeline_mode<synchronous>, transform_indices = @transform_2, window_bounds = array<i64: 1, 8>}, {pipeline_mode = #tpu.pipeline_mode<synchronous>, transform_indices = @transform_3, window_bounds = array<i64: 8, 32>}, {pipeline_mode = #tpu.pipeline_mode<synchronous>, transform_indices = @transform_4, window_bounds = array<i64: 1, 32>}, {transform_indices = @transform_5, window_bounds = array<i64: 64, 32>}, {transform_indices = @transform_6, window_bounds = array<i64: 64, 32>}]} {
    %c0 = arith.constant 0 : index
    %c0_0 = arith.constant 0 : index
    %0 = vector.load %arg1[%c0, %c0_0] : memref<64x8xf32, #tpu.memory_space<vmem>>, vector<64x8xf32>
    %c0_1 = arith.constant 0 : index
    %c0_2 = arith.constant 0 : index
    %1 = vector.load %arg2[%c0_1, %c0_2] : memref<1x8xf32, #tpu.memory_space<vmem>>, vector<1x8xf32>
    %2 = vector.broadcast %1 : vector<1x8xf32> to vector<64x8xf32>
    %3 = arith.mulf %0, %2 : vector<64x8xf32>
    %c0_3 = arith.constant 0 : index
    %c0_4 = arith.constant 0 : index
    %4 = vector.load %arg3[%c0_3, %c0_4] : memref<1x8xf32, #tpu.memory_space<vmem>>, vector<1x8xf32>
    %5 = vector.broadcast %4 : vector<1x8xf32> to vector<64x8xf32>
    %6 = arith.addf %3, %5 : vector<64x8xf32>
    %cst = arith.constant 0.000000e+00 : f32
    %7 = vector.broadcast %cst : f32 to vector<64x8xf32>
    %8 = arith.maximumf %6, %7 : vector<64x8xf32>
    %9 = arith.truncf %8 : vector<64x8xf32> to vector<64x8xbf16>
    %c0_5 = arith.constant 0 : index
    %c0_6 = arith.constant 0 : index
    %10 = vector.load %arg4[%c0_5, %c0_6] : memref<8x32xbf16, #tpu.memory_space<vmem>>, vector<8x32xbf16>
    %cst_7 = arith.constant dense<0.000000e+00> : vector<64x32xf32>
    %11 = tpu.matmul %9, %10, %cst_7 {dimension_numbers = #tpu.dot_dimension_numbers<[1], [0], [0], [1], [0, 0, 1, 1], [], []>} : vector<64x8xbf16>, vector<8x32xbf16>, vector<64x32xf32> -> vector<64x32xf32>
    %c0_8 = arith.constant 0 : index
    %c0_9 = arith.constant 0 : index
    %12 = vector.load %arg5[%c0_8, %c0_9] : memref<1x32xf32, #tpu.memory_space<vmem>>, vector<1x32xf32>
    %13 = vector.broadcast %12 : vector<1x32xf32> to vector<64x32xf32>
    %14 = arith.addf %11, %13 : vector<64x32xf32>
    %c0_10 = arith.constant 0 : index
    %c0_11 = arith.constant 0 : index
    %15 = vector.load %arg6[%c0_10, %c0_11] : memref<64x32xf32, #tpu.memory_space<vmem>>, vector<64x32xf32>
    %16 = arith.addf %14, %15 : vector<64x32xf32>
    %c0_12 = arith.constant 0 : index
    %c0_13 = arith.constant 0 : index
    %17 = vector.load %arg7[%c0_12, %c0_13] : memref<64x32xf32, #tpu.memory_space<vmem>>, vector<64x32xf32>
    tpu.vector_store %arg7[%c0_12, %c0_13], %16 {strides = array<i32>} : memref<64x32xf32, #tpu.memory_space<vmem>>, vector<64x32xf32>,
    return
  }
  func.func @transform_0(%arg0: i32) -> (i32, i32) {
    %c0_i32 = arith.constant 0 : i32
    %c0_i32_0 = arith.constant 0 : i32
    return %arg0, %c0_i32 : i32, i32
  }
  func.func @transform_1(%arg0: i32) -> (i32, i32) {
    %c0_i32 = arith.constant 0 : i32
    %c0_i32_0 = arith.constant 0 : i32
    %c0_i32_1 = arith.constant 0 : i32
    return %c0_i32, %c0_i32_0 : i32, i32
  }
  func.func @transform_2(%arg0: i32) -> (i32, i32) {
    %c0_i32 = arith.constant 0 : i32
    %c0_i32_0 = arith.constant 0 : i32
    %c0_i32_1 = arith.constant 0 : i32
    return %c0_i32, %c0_i32_0 : i32, i32
  }
  func.func @transform_3(%arg0: i32) -> (i32, i32) {
    %c0_i32 = arith.constant 0 : i32
    %c0_i32_0 = arith.constant 0 : i32
    %c0_i32_1 = arith.constant 0 : i32
    return %c0_i32, %c0_i32_0 : i32, i32
  }
  func.func @transform_4(%arg0: i32) -> (i32, i32) {
    %c0_i32 = arith.constant 0 : i32
    %c0_i32_0 = arith.constant 0 : i32
    %c0_i32_1 = arith.constant 0 : i32
    return %c0_i32, %c0_i32_0 : i32, i32
  }
  func.func @transform_5(%arg0: i32) -> (i32, i32) {
    %c0_i32 = arith.constant 0 : i32
    %c0_i32_0 = arith.constant 0 : i32
    return %arg0, %c0_i32 : i32, i32
  }
  func.func @transform_6(%arg0: i32) -> (i32, i32) {
    %c0_i32 = arith.constant 0 : i32
    %c0_i32_0 = arith.constant 0 : i32
    return %arg0, %c0_i32 : i32, i32
  }
}

</mosaic_0001>

<bundles_post_ra>
// kernel: _lambda_.6
= control target key start
LH: loop header
LB: loop body
LE: loop exit
PB: predicated region body
PF: predicated region fallthrough
CT: control target
= control target key end

     0   :  { %s791_s27 = smov 0   ;;  %s878_s0 = inlined_call_operand.vmem [shape: f32[128,16], index: 0, kind: input, shape index: {}]   ;;  %s879_s1 = inlined_call_operand.vmem [shape: f32[1,16], index: 1, kind: input, shape index: {}]   ;;  %s880_s2 = inlined_call_operand.vmem [shape: f32[1,16], index: 2, kind: input, shape index: {}]   ;;  %s881_s3 = inlined_call_operand.vmem [shape: bf16[16,32], index: 3, kind: input, shape index: {}]   ;;  %s882_s4 = inlined_call_operand.vmem [shape: f32[1,32], index: 4, kind: input, shape index: {}]   ;;  %s883_s5 = inlined_call_operand.vmem [shape: bf16[16,8], index: 5, kind: input, shape index: {}]   ;;  %s884_s6 = inlined_call_operand.vmem [shape: f32[1,8], index: 6, kind: input, shape index: {}]   ;;  %s885_s7 = inlined_call_operand.vmem [shape: f32[128,32], index: 7, kind: output, shape index: {0}]   ;;  %s886_s8 = inlined_call_operand.vmem [shape: f32[128,8], index: 8, kind: output, shape index: {1}]  }
   0x1 LB: > { %s671_s28 = sadd.s32 4294967295, %s744_s27   ;;  %p675_p0 = scmp.ge.s32.totalorder %s744_s27, 1  ;;  %s744_s27 = sphi %s791_s27, %s19_s27  }
   0x2   : > { %p266_p1 = scmp.lt.s32.totalorder %s744_s27, 3 }
   0x4   : > { %p267_p2 = pnand %p675_p0, %p266_p1 }
   0x5   : > { %v736_v0 = vld [vmem:[%s881_s3] sm:$0xff] (!%p267_p2)   ;;  %s676_s9 = sshll.u32 (!%p267_p2), %s671_s28, 3  ;;  %vm351_vm0 = vcmask (!%p267_p2), 130048   ;;  %vm429_vm1 = vcmask (!%p267_p2), 261120   ;;  %vm572_vm2 = vcmask (!%p267_p2), 64512  }
   0x6   : > { %270 = sbr.rel (%p267_p2) target bundleno = 252 (0xfc), region = 48  ;;  %p306_p3 = scmp.lt.s32.totalorder (!%p267_p2), %s676_s9, 15  ;;  %708 = vmatprep.subr.bf16.mxu0 (!%p267_p2), %v736_v0  ;;  %v737_v1 = vld [vmem:[%s883_s5] sm:$0xff] (!%p267_p2)  }
   0x7   : > { %709 = vmatpush3.bf16.msra.mxu0 (!%p267_p2), %v736_v0  ;;  %718 = vmatprep.subr.bf16.mxu1 (!%p267_p2), %v737_v1  ;;  %v688_v2 = vld [vmem:[%s879_s1] ss:$0 sm:$0xff] (!%p267_p2) }
   0x8   : > { %719 = vmatpush3.bf16.msra.mxu1 (!%p267_p2), %v737_v1  ;;  %v689_v3 = vld [vmem:[%s880_s2] ss:$0 sm:$0xff] (!%p267_p2) }
   0x9   : > { %v682_v44 = vld [vmem:[%s882_s4] ss:$0 sm:$0xff] (!%p267_p2) }
   0xa   : > { %v690_v53 = vld [vmem:[%s884_s6] ss:$0 sm:$0xff] (!%p267_p2) }
   0xd   : > { %s888_s9 = smov (!%p306_p3, %s676_s9), 15 }
   0xe   : > { %s805_s12 = sshll.u32 %s888_s9, 3 }
   0xf   : > { %s309_s17 = scalar_lea.vmem %s878_s0, %s805_s12  ;;  %s832_s24 = scalar_lea.vmem %s885_s7, %s805_s12 }
  0x10   : > { %v324_v4 = vld [vmem:[%s309_s17] sm:$0xff]  ;;  %v325_v5 = vld [vmem:[%s309_s17 + $0x8] sm:$0xff]  ;;  %v326_v6 = vld [vmem:[%s309_s17 + $0x10] sm:$0xff]  ;;  %s849_s30 = scalar_lea.vmem %s886_s8, %s805_s12 }
  0x11   : > { %v332_v7 = vpack.c.bf16 %v325_v5, %v324_v4  ;;  %v445_v8 = vmul.f32 %v688_v2, %v324_v4  ;;  %v446_v9 = vmul.f32 %v688_v2, %v325_v5  ;;  %v327_v10 = vld [vmem:[%s309_s17 + $0x18] sm:$0xff]  ;;  %v447_v11 = vmul.f32 %v688_v2, %v326_v6  ;;  %v328_v12 = vld [vmem:[%s309_s17 + $0x20] sm:$0xff]  ;;  %v329_v13 = vld [vmem:[%s309_s17 + $0x28] sm:$0xff] }
  0x12   : > { %v333_v14 = vpack.c.bf16 %v327_v10, %v326_v6  ;;  %v448_v15 = vmul.f32 %v688_v2, %v327_v10  ;;  %v334_v16 = vpack.c.bf16 %v329_v13, %v328_v12  ;;  %v449_v17 = vmul.f32 %v688_v2, %v328_v12  ;;  %v330_v18 = vld [vmem:[%s309_s17 + $0x30] sm:$0xff]  ;;  %v331_v19 = vld [vmem:[%s309_s17 + $0x38] sm:$0xff] }
  0x13   : > { %710 = vmatprep.mubr.msk.bf16.mxu0 %vm351_vm0, %v332_v7  ;;  %v460_v20 = vadd.f32 %v689_v3, %v445_v8  ;;  %v461_v21 = vadd.f32 %v689_v3, %v446_v9  ;;  %v462_v22 = vadd.f32 %v689_v3, %v447_v11  ;;  %v450_v23 = vmul.f32 %v688_v2, %v329_v13 }
  0x14   : > { %711 = vmatmul.mubr.msk.bf16.vlgmr.msra.gmra.mrb[0].mxu0 %vm351_vm0, %v333_v14  ;;  %v463_v24 = vadd.f32 %v689_v3, %v448_v15  ;;  %v451_v25 = vmul.f32 %v688_v2, %v330_v18  ;;  %v452_v26 = vmul.f32 %v688_v2, %v331_v19  ;;  %v464_v30 = vadd.f32 %v689_v3, %v449_v17 }
  0x15   : > { %v468_v27 = vmax.f32 %v460_v20, 0.0  ;;  %v469_v28 = vmax.f32 %v461_v21, 0.0  ;;  %v470_v29 = vmax.f32 %v462_v22, 0.0  ;;  %714 = vmatprep.mubr.msk.bf16.mxu0 %vm351_vm0, %v334_v16  ;;  %v465_v32 = vadd.f32 %v689_v3, %v450_v23 }
  0x16   : > { %v471_v31 = vmax.f32 %v463_v24, 0.0  ;;  %v466_v33 = vadd.f32 %v689_v3, %v451_v25  ;;  %v467_v34 = vadd.f32 %v689_v3, %v452_v26  ;;  %v472_v36 = vmax.f32 %v464_v30, 0.0 }
  0x17   : > { %v476_v35 = vpack.c.bf16 %v469_v28, %v468_v27  ;;  %v335_v38 = vpack.c.bf16 %v331_v19, %v330_v18  ;;  %v473_v39 = vmax.f32 %v465_v32, 0.0 }
  0x18   : > { %v477_v37 = vpack.c.bf16 %v471_v31, %v470_v29  ;;  %v474_v41 = vmax.f32 %v466_v33, 0.0  ;;  %v475_v42 = vmax.f32 %v467_v34, 0.0 }
  0x19   : > { %720 = vmatprep.mubr.msk.bf16.mxu1 %vm351_vm0, %v476_v35  ;;  %v478_v40 = vpack.c.bf16 %v473_v39, %v472_v36 }
  0x1a   : > { %721 = vmatmul.mubr.msk.bf16.vlgmr.msra.gmra.mrb[0].mxu1 %vm351_vm0, %v477_v37  ;;  %v479_v43 = vpack.c.bf16 %v475_v42, %v474_v41 }
  0x1b   : > { %724 = vmatprep.mubr.msk.bf16.mxu1 %vm351_vm0, %v478_v40 }
  0x1c   : > { %715 = vmatmul.mubr.msk.bf16.gmra.mrb[4].mxu0 %vm351_vm0, %v335_v38 }
  0x22   : > { %725 = vmatmul.mubr.msk.bf16.gmra.mrb[4].mxu1 %vm351_vm0, %v479_v43 }
  0xe7   : > { %v712_v45 = vpop.f32.mrb[0].mxu0 }
  0xe8   : > { %v407_v46 = vadd.f32 %v712_v45, %v682_v44  ;;  %v398_v47 = vpop.f32.mrb[1].mxu0 }
  0xe9   : > { %v399_v48 = vadd.f32 %v682_v44, %v398_v47  ;;  %v713_v49 = vpop.f32.mrb[2].mxu0 }
  0xea   : > { %432 = vst.msk [vmem:[%s832_s24 + $0x10] sm:$0xff] %vm429_vm1, %v407_v46  ;;  %v410_v50 = vadd.f32 %v713_v49, %v682_v44  ;;  %v401_v51 = vpop.f32.mrb[3].mxu0 }
  0xeb   : > { %430 = vst.msk [vmem:[%s832_s24] sm:$0xff] %vm429_vm1, %v399_v48  ;;  %v402_v52 = vadd.f32 %v682_v44, %v401_v51 }
  0xec   : > { %433 = vst.msk [vmem:[%s832_s24 + $0x18] sm:$0xff] %vm429_vm1, %v410_v50 }
  0xed   : > { %431 = vst.msk [vmem:[%s832_s24 + $0x8] sm:$0xff] %vm429_vm1, %v402_v52  ;;  %v722_v54 = vpop.f32.mrb[0].mxu1 }
  0xee   : > { %v550_v55 = vadd.f32 %v722_v54, %v690_v53  ;;  %v541_v56 = vpop.f32.mrb[1].mxu1 }
  0xef   : > { %v542_v57 = vadd.f32 %v690_v53, %v541_v56  ;;  %v723_v58 = vpop.f32.mrb[2].mxu1  ;;  %v716_v59 = vpop.f32.mrb[4].mxu0 }
  0xf0   : > { %575 = vst.msk [vmem:[%s849_s30 + $0x10] sm:$0xff] %vm572_vm2, %v550_v55  ;;  %v553_v60 = vadd.f32 %v723_v58, %v690_v53  ;;  %v544_v61 = vpop.f32.mrb[3].mxu1  ;;  %v423_v62 = vadd.f32 %v716_v59, %v682_v44  ;;  %v414_v63 = vpop.f32.mrb[5].mxu0 }
  0xf1   : > { %573 = vst.msk [vmem:[%s849_s30] sm:$0xff] %vm572_vm2, %v542_v57  ;;  %v545_v0 = vadd.f32 %v690_v53, %v544_v61  ;;  %v415_v1 = vadd.f32 %v682_v44, %v414_v63  ;;  %v717_v2 = vpop.f32.mrb[6].mxu0 }
  0xf2   : > { %576 = vst.msk [vmem:[%s849_s30 + $0x18] sm:$0xff] %vm572_vm2, %v553_v60  ;;  %v426_v3 = vadd.f32 %v717_v2, %v682_v44  ;;  %v417_v4 = vpop.f32.mrb[7].mxu0 }
  0xf3   : > { %436 = vst.msk [vmem:[%s832_s24 + $0x30] sm:$0xff] %vm429_vm1, %v423_v62  ;;  %434 = vst.msk [vmem:[%s832_s24 + $0x20] sm:$0xff] %vm429_vm1, %v415_v1  ;;  %v418_v5 = vadd.f32 %v682_v44, %v417_v4 }
  0xf4   : > { %574 = vst.msk [vmem:[%s849_s30 + $0x8] sm:$0xff] %vm572_vm2, %v545_v0 }
  0xf5   : > { %437 = vst.msk [vmem:[%s832_s24 + $0x38] sm:$0xff] %vm429_vm1, %v426_v3  ;;  %435 = vst.msk [vmem:[%s832_s24 + $0x28] sm:$0xff] %vm429_vm1, %v418_v5  ;;  %v726_v6 = vpop.f32.mrb[4].mxu1 }
  0xf6   : > { %v566_v7 = vadd.f32 %v726_v6, %v690_v53  ;;  %v557_v8 = vpop.f32.mrb[5].mxu1 }
  0xf7   : > { %v558_v9 = vadd.f32 %v690_v53, %v557_v8  ;;  %v727_v10 = vpop.f32.mrb[6].mxu1 }
  0xf8   : > { %579 = vst.msk [vmem:[%s849_s30 + $0x30] sm:$0xff] %vm572_vm2, %v566_v7  ;;  %v569_v11 = vadd.f32 %v727_v10, %v690_v53  ;;  %v560_v12 = vpop.f32.mrb[7].mxu1 }
  0xf9   : > { %577 = vst.msk [vmem:[%s849_s30 + $0x20] sm:$0xff] %vm572_vm2, %v558_v9  ;;  %v561_v13 = vadd.f32 %v690_v53, %v560_v12 }
  0xfa   : > { %580 = vst.msk [vmem:[%s849_s30 + $0x38] sm:$0xff] %vm572_vm2, %v569_v11 }
  0xfb   : > { %578 = vst.msk [vmem:[%s849_s30 + $0x28] sm:$0xff] %vm572_vm2, %v561_v13 }
  0xfc PF: > { %s19_s27 = sadd.s32 1, %s744_s27  }
  0xfd   : > { %p16_p4 = scmp.ge.s32.totalorder %s19_s27, 4  }
  0xff   :  { %18 = sbr.rel (!%p16_p4) target bundleno = 1 (0x1), region = 90 }

// kernel: _lambda_.8
= control target key start
LH: loop header
LB: loop body
LE: loop exit
PB: predicated region body
PF: predicated region fallthrough
CT: control target
= control target key end

     0   :  { %s601_s21 = smov 0   ;;  %s670_s0 = inlined_call_operand.vmem [shape: f32[128,8], index: 0, kind: input, shape index: {}]   ;;  %s671_s1 = inlined_call_operand.vmem [shape: f32[1,8], index: 1, kind: input, shape index: {}]   ;;  %s672_s2 = inlined_call_operand.vmem [shape: f32[1,8], index: 2, kind: input, shape index: {}]   ;;  %s673_s3 = inlined_call_operand.vmem [shape: bf16[8,32], index: 3, kind: input, shape index: {}]   ;;  %s674_s4 = inlined_call_operand.vmem [shape: f32[1,32], index: 4, kind: input, shape index: {}]   ;;  %s675_s5 = inlined_call_operand.vmem [shape: f32[128,32], index: 5, kind: input, shape index: {}]   ;;  %s676_s6 = inlined_call_operand.vmem [shape: f32[128,32], index: 6, kind: output, shape index: {}]  }
   0x1 LB: > { %s511_s22 = sadd.s32 4294967295, %s564_s21   ;;  %p515_p0 = scmp.ge.s32.totalorder %s564_s21, 1  ;;  %s564_s21 = sphi %s601_s21, %s16_s21  }
   0x2   : > { %p224_p1 = scmp.lt.s32.totalorder %s564_s21, 3 }
   0x4   : > { %p225_p2 = pnand %p515_p0, %p224_p1 }
   0x5   : > { %v328_v0 = vld [vmem:[%s673_s3] sm:$0xf] (!%p225_p2)  ;;  %vm349_vm0 = vcmask (!%p225_p2), 1043456   ;;  %s516_s25 = sshll.u32 (!%p225_p2), %s511_s22, 3  ;;  %vm336_vm1 = vcmask (!%p225_p2), 64512   ;;  %vm434_vm2 = vcmask (!%p225_p2), 261120  }
   0x6   : > { %228 = sbr.rel (%p225_p2) target bundleno = 248 (0xf8), region = 44  ;;  %548 = vmatprep.subr.msk.bf16.mxu0 (!%p225_p2), %vm349_vm0, %v328_v0  ;;  %549 = vmatprep.subr.msk.bf16.mxu1 (!%p225_p2), %vm349_vm0, %v328_v0  ;;  %v351_v1 = vsel (!%p225_p2), %vm349_vm0, %v328_v0, 0  ;;  %p260_p3 = scmp.lt.s32.totalorder (!%p225_p2), %s516_s25, 15  ;;  %v522_v2 = vld [vmem:[%s671_s1] ss:$0 sm:$0xff] (!%p225_p2) }
   0x7   : > { %537 = vmatpush3.bf16.msra.mxu0 (!%p225_p2), %v351_v1  ;;  %547 = vmatpush3.bf16.msra.mxu1 (!%p225_p2), %v351_v1  ;;  %v523_v3 = vld [vmem:[%s672_s2] ss:$0 sm:$0xff] (!%p225_p2) }
   0x8   : > { %v524_v40 = vld [vmem:[%s674_s4] ss:$0 sm:$0xff] (!%p225_p2) }
   0xd   : > { %s678_s25 = smov (!%p260_p3, %s516_s25), 15 }
   0xe   : > { %s612_s26 = sshll.u32 %s678_s25, 3 }
   0xf   : > { %s263_s7 = scalar_lea.vmem %s670_s0, %s612_s26  ;;  %s632_s12 = scalar_lea.vmem %s675_s5, %s612_s26 }
  0x10   : > { %v278_v4 = vld [vmem:[%s263_s7] sm:$0xff]  ;;  %v279_v5 = vld [vmem:[%s263_s7 + $0x8] sm:$0xff]  ;;  %v280_v11 = vld [vmem:[%s263_s7 + $0x10] sm:$0xff]  ;;  %s643_s17 = scalar_lea.vmem %s676_s6, %s612_s26 }
  0x11   : > { %v282_v6 = vld [vmem:[%s263_s7 + $0x20] sm:$0xff]  ;;  %v293_v7 = vmul.f32 %v522_v2, %v278_v4  ;;  %v294_v8 = vmul.f32 %v522_v2, %v279_v5  ;;  %v283_v9 = vld [vmem:[%s263_s7 + $0x28] sm:$0xff]  ;;  %v281_v12 = vld [vmem:[%s263_s7 + $0x18] sm:$0xff]  ;;  %v295_v14 = vmul.f32 %v522_v2, %v280_v11 }
  0x12   : > { %v297_v10 = vmul.f32 %v522_v2, %v282_v6  ;;  %v298_v13 = vmul.f32 %v522_v2, %v283_v9  ;;  %v296_v15 = vmul.f32 %v522_v2, %v281_v12  ;;  %v284_v16 = vld [vmem:[%s263_s7 + $0x30] sm:$0xff]  ;;  %v285_v17 = vld [vmem:[%s263_s7 + $0x38] sm:$0xff]  ;;  %v418_v45 = vld [vmem:[%s632_s12] sm:$0xff] }
  0x13   : > { %v308_v18 = vadd.f32 %v523_v3, %v293_v7  ;;  %v309_v19 = vadd.f32 %v523_v3, %v294_v8  ;;  %v299_v21 = vmul.f32 %v522_v2, %v284_v16  ;;  %v310_v23 = vadd.f32 %v523_v3, %v295_v14  ;;  %v420_v42 = vld [vmem:[%s632_s12 + $0x10] sm:$0xff]  ;;  %v421_v50 = vld [vmem:[%s632_s12 + $0x18] sm:$0xff]  ;;  %v422_v54 = vld [vmem:[%s632_s12 + $0x20] sm:$0xff] }
  0x14   : > { %v312_v20 = vadd.f32 %v523_v3, %v297_v10  ;;  %v313_v22 = vadd.f32 %v523_v3, %v298_v13  ;;  %v311_v24 = vadd.f32 %v523_v3, %v296_v15  ;;  %v300_v25 = vmul.f32 %v522_v2, %v285_v17  ;;  %v424_v47 = vld [vmem:[%s632_s12 + $0x30] sm:$0xff]  ;;  %v419_v57 = vld [vmem:[%s632_s12 + $0x8] sm:$0xff]  ;;  %v425_v61 = vld [vmem:[%s632_s12 + $0x38] sm:$0xff] }
  0x15   : > { %v316_v26 = vmax.f32 %v308_v18, 0.0  ;;  %v317_v27 = vmax.f32 %v309_v19, 0.0  ;;  %v314_v29 = vadd.f32 %v523_v3, %v299_v21  ;;  %v318_v31 = vmax.f32 %v310_v23, 0.0 }
  0x16   : > { %v320_v28 = vmax.f32 %v312_v20, 0.0  ;;  %v321_v30 = vmax.f32 %v313_v22, 0.0  ;;  %v319_v32 = vmax.f32 %v311_v24, 0.0  ;;  %v315_v33 = vadd.f32 %v523_v3, %v300_v25  ;;  %v423_v3 = vld [vmem:[%s632_s12 + $0x28] sm:$0xff] }
  0x17   : > { %v324_v34 = vpack.c.bf16 %v317_v27, %v316_v26  ;;  %v322_v35 = vmax.f32 %v314_v29, 0.0 }
  0x18   : > { %v326_v36 = vpack.c.bf16 %v321_v30, %v320_v28  ;;  %v325_v37 = vpack.c.bf16 %v319_v32, %v318_v31  ;;  %v323_v38 = vmax.f32 %v315_v33, 0.0 }
  0x19   : > { %538 = vmatprep.mubr.msk.bf16.mxu0 %vm336_vm1, %v324_v34 }
  0x1a   : > { %542 = vmatprep.mubr.msk.bf16.mxu1 %vm336_vm1, %v326_v36  ;;  %539 = vmatmul.mubr.msk.bf16.vlgmr.msra.gmra.mrb[0].mxu0 %vm336_vm1, %v325_v37  ;;  %v327_v39 = vpack.c.bf16 %v323_v38, %v322_v35 }
  0x1c   : > { %543 = vmatmul.mubr.msk.bf16.vlgmr.msra.gmra.mrb[0].mxu1 %vm336_vm1, %v327_v39 }
  0xed   : > { %v540_v41 = vpop.f32.mrb[0].mxu0 }
  0xee   : > { %v396_v43 = vadd.f32 %v540_v41, %v524_v40  ;;  %v387_v44 = vpop.f32.mrb[1].mxu0 }
  0xef   : > { %v544_v46 = vpop.f32.mrb[0].mxu1  ;;  %v388_v48 = vadd.f32 %v524_v40, %v387_v44  ;;  %v541_v49 = vpop.f32.mrb[2].mxu0 }
  0xf0   : > { %v428_v51 = vadd.f32 %v420_v42, %v396_v43  ;;  %v412_v52 = vadd.f32 %v544_v46, %v524_v40  ;;  %v403_v53 = vpop.f32.mrb[1].mxu1  ;;  %v399_v55 = vadd.f32 %v541_v49, %v524_v40  ;;  %v390_v56 = vpop.f32.mrb[3].mxu0 }
  0xf1   : > { %v426_v58 = vadd.f32 %v418_v45, %v388_v48  ;;  %v404_v59 = vadd.f32 %v524_v40, %v403_v53  ;;  %v545_v60 = vpop.f32.mrb[2].mxu1  ;;  %v391_v62 = vadd.f32 %v524_v40, %v390_v56 }
  0xf2   : > { %437 = vst.msk [vmem:[%s643_s17 + $0x10] sm:$0xff] %vm434_vm2, %v428_v51  ;;  %v432_v63 = vadd.f32 %v424_v47, %v412_v52  ;;  %v429_v0 = vadd.f32 %v421_v50, %v399_v55  ;;  %v415_v1 = vadd.f32 %v545_v60, %v524_v40  ;;  %v406_v2 = vpop.f32.mrb[3].mxu1 }
  0xf3   : > { %435 = vst.msk [vmem:[%s643_s17] sm:$0xff] %vm434_vm2, %v426_v58  ;;  %v430_v4 = vadd.f32 %v422_v54, %v404_v59  ;;  %v427_v5 = vadd.f32 %v419_v57, %v391_v62  ;;  %v407_v6 = vadd.f32 %v524_v40, %v406_v2 }
  0xf4   : > { %441 = vst.msk [vmem:[%s643_s17 + $0x30] sm:$0xff] %vm434_vm2, %v432_v63  ;;  %438 = vst.msk [vmem:[%s643_s17 + $0x18] sm:$0xff] %vm434_vm2, %v429_v0  ;;  %v433_v7 = vadd.f32 %v425_v61, %v415_v1 }
  0xf5   : > { %439 = vst.msk [vmem:[%s643_s17 + $0x20] sm:$0xff] %vm434_vm2, %v430_v4  ;;  %436 = vst.msk [vmem:[%s643_s17 + $0x8] sm:$0xff] %vm434_vm2, %v427_v5  ;;  %v431_v8 = vadd.f32 %v423_v3, %v407_v6 }
  0xf6   : > { %442 = vst.msk [vmem:[%s643_s17 + $0x38] sm:$0xff] %vm434_vm2, %v433_v7 }
  0xf7   : > { %440 = vst.msk [vmem:[%s643_s17 + $0x28] sm:$0xff] %vm434_vm2, %v431_v8 }
  0xf8 PF: > { %s16_s21 = sadd.s32 1, %s564_s21  }
  0xf9   : > { %p13_p4 = scmp.ge.s32.totalorder %s16_s21, 4  }
  0xfb   :  { %15 = sbr.rel (!%p13_p4) target bundleno = 1 (0x1), region = 77 }

// kernel: _lambda_.9
= control target key start
LH: loop header
LB: loop body
LE: loop exit
PB: predicated region body
PF: predicated region fallthrough
CT: control target
= control target key end

     0   :  { %s535_s18 = smov 0   ;;  %s586_s0 = inlined_call_operand.vmem [shape: f32[128,32], index: 0, kind: input, shape index: {}]   ;;  %s587_s1 = inlined_call_operand.vmem [shape: f32[1,32], index: 1, kind: input, shape index: {}]   ;;  %s588_s2 = inlined_call_operand.vmem [shape: f32[1,32], index: 2, kind: input, shape index: {}]   ;;  %s589_s3 = inlined_call_operand.vmem [shape: bf16[32,8], index: 3, kind: input, shape index: {}]   ;;  %s590_s4 = inlined_call_operand.vmem [shape: f32[1,8], index: 4, kind: input, shape index: {}]   ;;  %s591_s5 = inlined_call_operand.vmem [shape: f32[128,8], index: 5, kind: output, shape index: {}]  }
   0x1 LB: > { %s445_s19 = sadd.s32 4294967295, %s503_s18   ;;  %p449_p0 = scmp.ge.s32.totalorder %s503_s18, 1  ;;  %s503_s18 = sphi %s535_s18, %s15_s18  }
   0x2   : > { %p188_p1 = scmp.lt.s32.totalorder %s503_s18, 3 }
   0x4   : > { %p189_p2 = pnand %p449_p0, %p188_p1 }
   0x5   : > { %v495_v0 = vld [vmem:[%s589_s3] sm:$0xff] (!%p189_p2)   ;;  %s450_s22 = sshll.u32 (!%p189_p2), %s445_s19, 3  ;;  %v496_v1 = vld [vmem:[%s589_s3 + $0x8] sm:$0xff] (!%p189_p2)   ;;  %vm302_vm0 = vcmask (!%p189_p2), 261120   ;;  %vm380_vm1 = vcmask (!%p189_p2), 64512  }
   0x6   : > { %192 = sbr.rel (%p189_p2) target bundleno = 246 (0xf6), region = 40  ;;  %p217_p3 = scmp.lt.s32.totalorder (!%p189_p2), %s450_s22, 15  ;;  %471 = vmatprep.subr.bf16.mxu0 (!%p189_p2), %v495_v0  ;;  %483 = vmatprep.subr.bf16.mxu1 (!%p189_p2), %v495_v0  ;;  %v454_v2 = vld [vmem:[%s587_s1] ss:$0 sm:$0xff] (!%p189_p2) }
   0x7   : > { %472 = vmatpush3.bf16.msra.mxu0 (!%p189_p2), %v495_v0  ;;  %485 = vmatpush3.bf16.msra.mxu1 (!%p189_p2), %v495_v0  ;;  %v455_v3 = vld [vmem:[%s588_s2] ss:$0 sm:$0xff] (!%p189_p2) }
   0x8   : > { %473 = vmatprep.subr.bf16.mxu0 (!%p189_p2), %v496_v1  ;;  %484 = vmatprep.subr.bf16.mxu1 (!%p189_p2), %v496_v1  ;;  %v456_v40 = vld [vmem:[%s590_s4] ss:$0 sm:$0xff] (!%p189_p2) }
   0xb   : > { %474 = vmatpush3.bf16.msra.mxu0 (!%p189_p2), %v496_v1  ;;  %486 = vmatpush3.bf16.msra.mxu1 (!%p189_p2), %v496_v1 }
   0xd   : > { %s593_s22 = smov (!%p217_p3, %s450_s22), 15 }
   0xe   : > { %s451_s25 = sshll.u32 %s593_s22, 3 }
   0xf   : > { %s220_s30 = scalar_lea.vmem %s586_s0, %s451_s25  ;;  %s226_s12 = scalar_lea.vmem %s591_s5, %s451_s25 }
  0x10   : > { %v229_v4 = vld [vmem:[%s220_s30] sm:$0xff]  ;;  %v230_v5 = vld [vmem:[%s220_s30 + $0x8] sm:$0xff]  ;;  %v231_v11 = vld [vmem:[%s220_s30 + $0x10] sm:$0xff] }
  0x11   : > { %v233_v6 = vld [vmem:[%s220_s30 + $0x20] sm:$0xff]  ;;  %v244_v7 = vmul.f32 %v454_v2, %v229_v4  ;;  %v245_v8 = vmul.f32 %v454_v2, %v230_v5  ;;  %v234_v9 = vld [vmem:[%s220_s30 + $0x28] sm:$0xff]  ;;  %v232_v12 = vld [vmem:[%s220_s30 + $0x18] sm:$0xff]  ;;  %v246_v14 = vmul.f32 %v454_v2, %v231_v11 }
  0x12   : > { %v248_v10 = vmul.f32 %v454_v2, %v233_v6  ;;  %v249_v13 = vmul.f32 %v454_v2, %v234_v9  ;;  %v247_v15 = vmul.f32 %v454_v2, %v232_v12  ;;  %v235_v16 = vld [vmem:[%s220_s30 + $0x30] sm:$0xff]  ;;  %v236_v17 = vld [vmem:[%s220_s30 + $0x38] sm:$0xff] }
  0x13   : > { %v259_v18 = vadd.f32 %v455_v3, %v244_v7  ;;  %v260_v19 = vadd.f32 %v455_v3, %v245_v8  ;;  %v250_v21 = vmul.f32 %v454_v2, %v235_v16  ;;  %v261_v23 = vadd.f32 %v455_v3, %v246_v14 }
  0x14   : > { %v263_v20 = vadd.f32 %v455_v3, %v248_v10  ;;  %v264_v22 = vadd.f32 %v455_v3, %v249_v13  ;;  %v262_v24 = vadd.f32 %v455_v3, %v247_v15  ;;  %v251_v25 = vmul.f32 %v454_v2, %v236_v17 }
  0x15   : > { %v267_v26 = vmax.f32 %v259_v18, 0.0  ;;  %v268_v27 = vmax.f32 %v260_v19, 0.0  ;;  %v265_v29 = vadd.f32 %v455_v3, %v250_v21  ;;  %v269_v31 = vmax.f32 %v261_v23, 0.0 }
  0x16   : > { %v271_v28 = vmax.f32 %v263_v20, 0.0  ;;  %v272_v30 = vmax.f32 %v264_v22, 0.0  ;;  %v270_v32 = vmax.f32 %v262_v24, 0.0  ;;  %v266_v33 = vadd.f32 %v455_v3, %v251_v25 }
  0x17   : > { %v275_v34 = vpack.c.bf16 %v268_v27, %v267_v26  ;;  %v273_v35 = vmax.f32 %v265_v29, 0.0 }
  0x18   : > { %v277_v36 = vpack.c.bf16 %v272_v30, %v271_v28  ;;  %v276_v37 = vpack.c.bf16 %v270_v32, %v269_v31  ;;  %v274_v38 = vmax.f32 %v266_v33, 0.0 }
  0x19   : > { %475 = vmatprep.mubr.msk.bf16.mxu0 %vm302_vm0, %v275_v34 }
  0x1a   : > { %479 = vmatprep.mubr.msk.bf16.mxu1 %vm302_vm0, %v277_v36  ;;  %476 = vmatmul.mubr.msk.bf16.vlgmr.msra.gmra.mrb[0].mxu0 %vm302_vm0, %v276_v37  ;;  %v278_v39 = vpack.c.bf16 %v274_v38, %v273_v35 }
  0x1c   : > { %480 = vmatmul.mubr.msk.bf16.vlgmr.msra.gmra.mrb[0].mxu1 %vm302_vm0, %v278_v39 }
  0xed   : > { %v477_v41 = vpop.f32.mrb[0].mxu0 }
  0xee   : > { %v358_v42 = vadd.f32 %v477_v41, %v456_v40  ;;  %v349_v43 = vpop.f32.mrb[1].mxu0 }
  0xef   : > { %v481_v44 = vpop.f32.mrb[0].mxu1  ;;  %v350_v45 = vadd.f32 %v456_v40, %v349_v43  ;;  %v478_v46 = vpop.f32.mrb[2].mxu0 }
  0xf0   : > { %383 = vst.msk [vmem:[%s226_s12 + $0x10] sm:$0xff] %vm380_vm1, %v358_v42  ;;  %v374_v47 = vadd.f32 %v481_v44, %v456_v40  ;;  %v365_v48 = vpop.f32.mrb[1].mxu1  ;;  %v361_v49 = vadd.f32 %v478_v46, %v456_v40  ;;  %v352_v50 = vpop.f32.mrb[3].mxu0 }
  0xf1   : > { %381 = vst.msk [vmem:[%s226_s12] sm:$0xff] %vm380_vm1, %v350_v45  ;;  %v366_v51 = vadd.f32 %v456_v40, %v365_v48  ;;  %v482_v52 = vpop.f32.mrb[2].mxu1  ;;  %v353_v53 = vadd.f32 %v456_v40, %v352_v50 }
  0xf2   : > { %387 = vst.msk [vmem:[%s226_s12 + $0x30] sm:$0xff] %vm380_vm1, %v374_v47  ;;  %384 = vst.msk [vmem:[%s226_s12 + $0x18] sm:$0xff] %vm380_vm1, %v361_v49  ;;  %v377_v54 = vadd.f32 %v482_v52, %v456_v40  ;;  %v368_v55 = vpop.f32.mrb[3].mxu1 }
  0xf3   : > { %385 = vst.msk [vmem:[%s226_s12 + $0x20] sm:$0xff] %vm380_vm1, %v366_v51  ;;  %382 = vst.msk [vmem:[%s226_s12 + $0x8] sm:$0xff] %vm380_vm1, %v353_v53  ;;  %v369_v56 = vadd.f32 %v456_v40, %v368_v55 }
  0xf4   : > { %388 = vst.msk [vmem:[%s226_s12 + $0x38] sm:$0xff] %vm380_vm1, %v377_v54 }
  0xf5   : > { %386 = vst.msk [vmem:[%s226_s12 + $0x28] sm:$0xff] %vm380_vm1, %v369_v56 }
  0xf6 PF: > { %s15_s18 = sadd.s32 1, %s503_s18  }
  0xf7   : > { %p12_p4 = scmp.ge.s32.totalorder %s15_s18, 4  }
  0xf9   :  { %14 = sbr.rel (!%p12_p4) target bundleno = 1 (0x1), region = 70 }

// kernel: _lambda_.11
= control target key start
LH: loop header
LB: loop body
LE: loop exit
PB: predicated region body
PF: predicated region fallthrough
CT: control target
= control target key end

     0   :  { %11 = vsyncpa [#allocation3], 0  ;;  %s863_s0 = inlined_call_operand.vmem [shape: f32[128,8], index: 0, kind: input, shape index: {}]   ;;  %s864_s1 = inlined_call_operand.vmem [shape: f32[1,8], index: 1, kind: input, shape index: {}]   ;;  %s865_s2 = inlined_call_operand.vmem [shape: f32[1,8], index: 2, kind: input, shape index: {}]   ;;  %s866_s3 = inlined_call_operand.vmem [shape: bf16[8,32], index: 3, kind: input, shape index: {}]   ;;  %s867_s4 = inlined_call_operand.vmem [shape: f32[1,32], index: 4, kind: input, shape index: {}]   ;;  %s868_s5 = inlined_call_operand.vmem [shape: f32[128,32], index: 5, kind: input, shape index: {}]   ;;  %s869_s6 = inlined_call_operand.hbm [shape: f32[128,32], index: 6, kind: output, shape index: {}]  }
   0x1   :  { %13 = vsyncpa [#allocation3 + $0x1], 0  ;;  %s713_s21 = smov 0   ;;  %s715_s22 = smov 0  }
   0x2   :  { %s717_s23 = smov 0   ;;  %s719_s24 = smov 0  }
   0x3 LB: > { %s734_s25 = sadd.s32 4294967295, %s673_s24   ;;  %s529_s26 = sadd.s32 4294967294, %s673_s24   ;;  %s673_s24 = sphi %s719_s24, %s875_s24   ;;  %s669_s23 = sphi %s717_s23, %s874_s23   ;;  %s665_s22 = sphi %s715_s22, %s873_s22   ;;  %s661_s21 = sphi %s713_s21, %s872_s21  }
   0x4   : > { %s738_s27 = sadd.s32 1, %s673_s24   ;;  %s162_s28 = sadd.s32 1, %s669_s23 }
   0x5   : > { %s159_s29 = ssub.s32 %s673_s24, %s738_s27  ;;  %p172_p0 = scmp.ne.s32.totalorder %s669_s23, %s665_s22 }
   0x6   : > { %p160_p1 = scmp.eq.s32.totalorder %s159_s29, 0  ;;  %p173_p2 = scmp.eq.s32.totalorder %s734_s25, 1 }
   0x7   : > { %p178_p3 = scmp.ne.s32.totalorder %s665_s22, %s661_s21  ;;  %p179_p4 = scmp.eq.s32.totalorder %s529_s26, 1 }
   0x8   : > { %s749_s30 = scalar_select %p160_p1, %s669_s23, %s162_s28  }
   0x9   : > { %p751_p5 = por %p173_p2, %p172_p0  ;;  %p755_p6 = por %p179_p4, %p178_p3 }
   0xa   : > { %p532_p7 = scmp.ge.s32.totalorder %s673_s24, 1  ;;  %p227_p8 = scmp.lt.s32.totalorder %s673_s24, 3 }
   0xc   : > { %p228_p9 = pnand %p532_p7, %p227_p8 }
   0xd   : > { %v326_v0 = vld [vmem:[%s866_s3] sm:$0xf] (!%p228_p9)  ;;  %vm347_vm0 = vcmask (!%p228_p9), 1043456   ;;  %s534_s11 = sshll.u32 (!%p228_p9), %s734_s25, 3  ;;  %vm334_vm1 = vcmask (!%p228_p9), 64512   ;;  %s259_s20 = sand.u32 (!%p228_p9), 1, %s665_s22  }
   0xe   : > { %231 = sbr.rel (%p228_p9) target bundleno = 270 (0x10e), region = 44  ;;  %568 = vmatprep.subr.msk.bf16.mxu0 (!%p228_p9), %vm347_vm0, %v326_v0  ;;  %569 = vmatprep.subr.msk.bf16.mxu1 (!%p228_p9), %vm347_vm0, %v326_v0  ;;  %v349_v1 = vsel (!%p228_p9), %vm347_vm0, %v326_v0, 0  ;;  %p263_p10 = scmp.lt.s32.totalorder (!%p228_p9), %s534_s11, 15  ;;  %v538_v2 = vld [vmem:[%s864_s1] ss:$0 sm:$0xff] (!%p228_p9)  ;;  %vm432_vm2 = vcmask (!%p228_p9), 261120  }
   0xf   : > { %557 = vmatpush3.bf16.msra.mxu0 (!%p228_p9), %v349_v1  ;;  %567 = vmatpush3.bf16.msra.mxu1 (!%p228_p9), %v349_v1  ;;  %v539_v3 = vld [vmem:[%s865_s2] ss:$0 sm:$0xff] (!%p228_p9)  ;;  %s533_s13 = sshll.u32 (!%p228_p9), %s259_s20, 6  ;;  %s675_s19 = smov (!%p228_p9), [#allocation2]  }
  0x10   : > { %v540_v40 = vld [vmem:[%s867_s4] ss:$0 sm:$0xff] (!%p228_p9)  ;;  %s615_s26 = sshll.u32 (!%p228_p9), %s675_s19, 4  ;;  %s616_s26 = int_to_ptr.vmem [resolvable:$false] %s615_s26 }
  0x11   : > { %s617_s28 = scalar_lea.vmem (!%p228_p9), %s616_s26, 2048 }
  0x15   : > { %s877_s11 = smov (!%p263_p10, %s534_s11), 15 }
  0x16   : > { %s535_s12 = sshll.u32 %s877_s11, 3  ;;  %s550_s11 = sshll.u32 %s734_s25, 10 }
  0x17   : > { %s266_s17 = scalar_lea.vmem %s863_s0, %s535_s12  ;;  %s789_s29 = scalar_lea.vmem %s868_s5, %s535_s12 }
  0x18   : > { %v276_v4 = vld [vmem:[%s266_s17] sm:$0xff]  ;;  %v277_v5 = vld [vmem:[%s266_s17 + $0x8] sm:$0xff]  ;;  %v278_v11 = vld [vmem:[%s266_s17 + $0x10] sm:$0xff]  ;;  %s261_s12 = scalar_lea.vmem [#allocation2], %s533_s13  ;;  %s812_s16 = scalar_lea.hbm %s869_s6, %s550_s11 }
  0x19   : > { %v280_v6 = vld [vmem:[%s266_s17 + $0x20] sm:$0xff]  ;;  %v291_v7 = vmul.f32 %v538_v2, %v276_v4  ;;  %v292_v8 = vmul.f32 %v538_v2, %v277_v5  ;;  %v281_v9 = vld [vmem:[%s266_s17 + $0x28] sm:$0xff]  ;;  %v279_v12 = vld [vmem:[%s266_s17 + $0x18] sm:$0xff]  ;;  %v293_v14 = vmul.f32 %v538_v2, %v278_v11  ;;  %s455_s14 = sshll.u32 %s261_s12, 4  ;;  %s814_s14 = int_to_ptr.vmem [resolvable:$true] %s455_s14 }
  0x1a   : > { %v295_v10 = vmul.f32 %v538_v2, %v280_v6  ;;  %v296_v13 = vmul.f32 %v538_v2, %v281_v9  ;;  %v294_v15 = vmul.f32 %v538_v2, %v279_v12  ;;  %v282_v16 = vld [vmem:[%s266_s17 + $0x30] sm:$0xff]  ;;  %v283_v17 = vld [vmem:[%s266_s17 + $0x38] sm:$0xff]  ;;  %v416_v45 = vld [vmem:[%s789_s29] sm:$0xff]  ;;  %s822_s17 = scalar_lea.sflag [#allocation3], %s259_s20  ;;  %s611_s18 = scalar_lea.vmem %s814_s14, 1024 }
  0x1b   : > { %v306_v18 = vadd.f32 %v539_v3, %v291_v7  ;;  %v307_v19 = vadd.f32 %v539_v3, %v292_v8  ;;  %v297_v21 = vmul.f32 %v538_v2, %v282_v16  ;;  %v308_v23 = vadd.f32 %v539_v3, %v293_v14  ;;  %v418_v42 = vld [vmem:[%s789_s29 + $0x10] sm:$0xff]  ;;  %v419_v50 = vld [vmem:[%s789_s29 + $0x18] sm:$0xff]  ;;  %v420_v54 = vld [vmem:[%s789_s29 + $0x20] sm:$0xff]  ;;  %p612_p11 = scmp.ne.s32.totalorder %s814_s14, %s611_s18  ;;  %p618_p0 = scmp.lt.s32.totalorder %s814_s14, %s616_s26 }
  0x1c   : > { %v310_v20 = vadd.f32 %v539_v3, %v295_v10  ;;  %v311_v22 = vadd.f32 %v539_v3, %v296_v13  ;;  %v309_v24 = vadd.f32 %v539_v3, %v294_v15  ;;  %v298_v25 = vmul.f32 %v538_v2, %v283_v17  ;;  %v422_v47 = vld [vmem:[%s789_s29 + $0x30] sm:$0xff]  ;;  %v417_v57 = vld [vmem:[%s789_s29 + $0x8] sm:$0xff]  ;;  %v423_v61 = vld [vmem:[%s789_s29 + $0x38] sm:$0xff]  ;;  %p619_p1 = scmp.lt.s32.totalorder %s617_s28, %s611_s18 }
  0x1d   : > { %v314_v26 = vmax.f32 %v306_v18, 0.0  ;;  %v315_v27 = vmax.f32 %v307_v19, 0.0  ;;  %v312_v29 = vadd.f32 %v539_v3, %v297_v21  ;;  %v316_v31 = vmax.f32 %v308_v23, 0.0  ;;  %p613_p12 = pnand %p612_p11, %p751_p5 }
  0x1e   : > { %v318_v28 = vmax.f32 %v310_v20, 0.0  ;;  %v319_v30 = vmax.f32 %v311_v22, 0.0  ;;  %v317_v32 = vmax.f32 %v309_v24, 0.0  ;;  %v313_v33 = vadd.f32 %v539_v3, %v298_v25  ;;  %v421_v3 = vld [vmem:[%s789_s29 + $0x28] sm:$0xff]  ;;  %p620_p2 = por %p619_p1, %p618_p0 }
  0x1f   : > { %v322_v34 = vpack.c.bf16 %v315_v27, %v314_v26  ;;  %v320_v35 = vmax.f32 %v312_v29, 0.0  ;;  %p614_p13 = pneg %p613_p12 }
  0x20   : > { %v324_v36 = vpack.c.bf16 %v319_v30, %v318_v28  ;;  %v323_v37 = vpack.c.bf16 %v317_v32, %v316_v31  ;;  %v321_v38 = vmax.f32 %v313_v33, 0.0 }
  0x21   : > { %558 = vmatprep.mubr.msk.bf16.mxu0 %vm334_vm1, %v322_v34  ;;  %p621_p3 = pnand %p620_p2, %p614_p13 }
  0x22   : > { %562 = vmatprep.mubr.msk.bf16.mxu1 %vm334_vm1, %v324_v36  ;;  %559 = vmatmul.mubr.msk.bf16.vlgmr.msra.gmra.mrb[0].mxu0 %vm334_vm1, %v323_v37  ;;  %v325_v39 = vpack.c.bf16 %v321_v38, %v320_v35 }
  0x24   : > { %563 = vmatmul.mubr.msk.bf16.vlgmr.msra.gmra.mrb[0].mxu1 %vm334_vm1, %v325_v39 }
  0xf5   : > { %v560_v41 = vpop.f32.mrb[0].mxu0 }
  0xf6   : > { %v394_v43 = vadd.f32 %v560_v41, %v540_v40  ;;  %v385_v44 = vpop.f32.mrb[1].mxu0 }
  0xf7   : > { %v564_v46 = vpop.f32.mrb[0].mxu1  ;;  %v386_v48 = vadd.f32 %v540_v40, %v385_v44  ;;  %v561_v49 = vpop.f32.mrb[2].mxu0 }
  0xf8   : > { %v426_v51 = vadd.f32 %v418_v42, %v394_v43  ;;  %v410_v52 = vadd.f32 %v564_v46, %v540_v40  ;;  %v401_v53 = vpop.f32.mrb[1].mxu1  ;;  %v397_v55 = vadd.f32 %v561_v49, %v540_v40  ;;  %v388_v56 = vpop.f32.mrb[3].mxu0 }
  0xf9   : > { %v424_v58 = vadd.f32 %v416_v45, %v386_v48  ;;  %v402_v59 = vadd.f32 %v540_v40, %v401_v53  ;;  %v565_v60 = vpop.f32.mrb[2].mxu1  ;;  %v389_v62 = vadd.f32 %v540_v40, %v388_v56 }
  0xfa   : > { %435 = vst.msk [vmem:[%s261_s12 + $0x10] sm:$0xff] %vm432_vm2, %v426_v51  ;;  %v430_v63 = vadd.f32 %v422_v47, %v410_v52  ;;  %v427_v0 = vadd.f32 %v419_v50, %v397_v55  ;;  %v413_v1 = vadd.f32 %v565_v60, %v540_v40  ;;  %v404_v2 = vpop.f32.mrb[3].mxu1 }
  0xfb   : > { %433 = vst.msk [vmem:[%s261_s12] sm:$0xff] %vm432_vm2, %v424_v58  ;;  %v428_v4 = vadd.f32 %v420_v54, %v402_v59  ;;  %v425_v5 = vadd.f32 %v417_v57, %v389_v62  ;;  %v405_v6 = vadd.f32 %v540_v40, %v404_v2 }
  0xfc   : > { %439 = vst.msk [vmem:[%s261_s12 + $0x30] sm:$0xff] %vm432_vm2, %v430_v63  ;;  %436 = vst.msk [vmem:[%s261_s12 + $0x18] sm:$0xff] %vm432_vm2, %v427_v0  ;;  %v431_v7 = vadd.f32 %v423_v61, %v413_v1 }
  0xfd   : > { %437 = vst.msk [vmem:[%s261_s12 + $0x20] sm:$0xff] %vm432_vm2, %v428_v4  ;;  %434 = vst.msk [vmem:[%s261_s12 + $0x8] sm:$0xff] %vm432_vm2, %v425_v5  ;;  %v429_v8 = vadd.f32 %v421_v3, %v405_v6 }
  0xfe   : > { %440 = vst.msk [vmem:[%s261_s12 + $0x38] sm:$0xff] %vm432_vm2, %v431_v7 }
  0xff   : > { %438 = vst.msk [vmem:[%s261_s12 + $0x28] sm:$0xff] %vm432_vm2, %v429_v8 }
 0x100   : > { %624 = shalt.err (!%p621_p3)
}
 0x101   : > { %s625_s20 = scalar_lea.hbm %s812_s16, 1024  ;;  %s629_s10 = scalar_lea.hbm %s869_s6, 2048 }
 0x102   : > { %p626_p4 = scmp.ne.s32.totalorder %s812_s16, %s625_s20  ;;  %p630_p9 = scmp.lt.u32.totalorder %s812_s16, %s869_s6 }
 0x103   : > { %p631_p10 = scmp.lt.u32.totalorder %s629_s10, %s625_s20  ;;  %p633_p12 = scmp.lt.u32.totalorder %s625_s20, %s812_s16 }
 0x104   : > { %p627_p7 = pnand %p626_p4, %p751_p5 }
 0x105   : > { %p632_p11 = por %p631_p10, %p630_p9 }
 0x106   : > { %p628_p8 = pneg %p627_p7 }
 0x107   : > { %p634_p13 = por %p633_p12, %p632_p11 }
 0x109   : > { %p635_p0 = pnand %p634_p13, %p628_p8 }
 0x10b   : > { %638 = shalt.err (!%p635_p0)
}
 0x10c   : > { %s676_s12 = smov 128   ;;  %s677_s25 = smov 8  }
 0x10d   : > { %570 = dma.vmem_to_hbm [thread:$0]  (%p751_p5), %s814_s14, 1024, %s812_s16, %s822_s17, %s676_s12, %s676_s12, %s677_s25  }
 0x10e PF: > { %p576_p1 = scmp.ge.s32.totalorder %s673_s24, 2  ;;  %s470_s15 = sand.u32 1, %s661_s21  }
 0x10f   : > { %s471_s18 = scalar_lea.sflag [#allocation3], %s470_s15 }
 0x110   : > { %p573_p2 = pnand %p576_p1, %p755_p6 }
 0x112   : > { %656 = dma.done.wait (!%p573_p2), %s471_s18, 1024  }
 0x113   : > { %658 = vsyncadd (!%p573_p2), %s471_s18, 4294966272  ;;  %p16_p3 = scmp.ge.s32.totalorder %s738_s27, 4   ;;  %s872_s21 = smov %s665_s22 }
 0x114   : > { %s873_s22 = smov %s669_s23  ;;  %s874_s23 = smov %s749_s30 }
 0x115   : > { %s875_s24 = smov %s738_s27  ;;  %18 = sbr.rel (!%p16_p3) target bundleno = 3 (0x3), region = 82 }
 0x11c   :  { %476 = vsyncpa [#allocation3], 1 }
 0x11d   :  { %478 = vsyncpa [#allocation3 + $0x1], 1 }

// kernel: _lambda_.7
= control target key start
LH: loop header
LB: loop body
LE: loop exit
PB: predicated region body
PF: predicated region fallthrough
CT: control target
= control target key end

     0   :  { %s1927_s24 = smov 0   ;;  %s2328_s0 = inlined_call_operand.vmem [shape: f32[2,64,8], index: 0, kind: input, shape index: {}]   ;;  %s2329_s1 = inlined_call_operand.vmem [shape: f32[1,8], index: 1, kind: input, shape index: {}]   ;;  %s2330_s2 = inlined_call_operand.vmem [shape: f32[1,8], index: 2, kind: input, shape index: {}]   ;;  %s2331_s3 = inlined_call_operand.vmem [shape: bf16[9,8,8], index: 3, kind: input, shape index: {}]   ;;  %s2332_s4 = inlined_call_operand.vmem [shape: f32[1,8], index: 4, kind: input, shape index: {}]   ;;  %s2333_s5 = inlined_call_operand.vmem [shape: bf16[64,1], index: 5, kind: input, shape index: {}]   ;;  %s2334_s6 = inlined_call_operand.vmem [shape: bf16[64,1], index: 6, kind: input, shape index: {}]   ;;  %s2335_s7 = inlined_call_operand.vmem [shape: f32[2,64,8], index: 7, kind: output, shape index: {}]  }
   0x1 LB: > { %s1648_s25 = sadd.s32 4294967295, %s1882_s24   ;;  %p1652_p0 = scmp.ge.s32.totalorder %s1882_s24, 1  ;;  %s1882_s24 = sphi %s1927_s24, %s17_s24  }
   0x2   : > { %p237_p1 = scmp.lt.s32.totalorder %s1882_s24, 3 }
   0x4   : > { %p238_p2 = pnand %p1652_p0, %p237_p1 }
   0x5   : > { %v336_v0 = vld [vmem:[%s2333_s5 + $0x18] sm:$0xf] (!%p238_p2)  ;;  %v334_v1 = vld [vmem:[%s2333_s5 + $0x10] sm:$0xf] (!%p238_p2)  ;;  %v1884_v2 = vmov (!%p238_p2), 0   ;;  %vm616_vm0 = vcmask (!%p238_p2), 1043456   ;;  %v346_v34 = vlaneseq (!%p238_p2) }
   0x6   : > { %241 = sbr.rel (%p238_p2) target bundleno = 465 (0x1d1), region = 48  ;;  %1875 = vset.pattern.permute.xlu1 (!%p238_p2), %v1884_v2  ;;  %1874 = vset.pattern.permute.xlu0 (!%p238_p2), %v1884_v2  ;;  %v337_v3 = vld [vmem:[%s2333_s5 + $0x1c] sm:$0xf] (!%p238_p2)  ;;  %v335_v4 = vld [vmem:[%s2333_s5 + $0x14] sm:$0xf] (!%p238_p2)  ;;  %vm594_vm1 = vcmask (!%p238_p2), 64512  }
   0x7   : > { %412 = vperm.xlu1 (!%p238_p2), %1875, %v336_v0   ;;  %388 = vperm.xlu0 (!%p238_p2), %1874, %v334_v1   ;;  %v331_v5 = vld [vmem:[%s2333_s5 + $0x4] sm:$0xf] (!%p238_p2)  ;;  %v330_v6 = vld [vmem:[%s2333_s5] sm:$0xf] (!%p238_p2)  ;;  %v333_v9 = vld [vmem:[%s2333_s5 + $0xc] sm:$0xf] (!%p238_p2) }
   0x8   : > { %v603_v7 = vld [vmem:[%s2331_s3] sm:$0xf] (!%p238_p2)  ;;  %v332_v10 = vld [vmem:[%s2333_s5 + $0x8] sm:$0xf] (!%p238_p2)  ;;  %v1968_v11 = vld [vmem:[%s2331_s3 + $0x4] sm:$0xf] (!%p238_p2) }
   0x9   : > { %1854 = vmatprep.subr.msk.bf16.mxu1 (!%p238_p2), %vm616_vm0, %v603_v7  ;;  %v618_v8 = vsel (!%p238_p2), %vm616_vm0, %v603_v7, 0  ;;  %1853 = vmatprep.subr.msk.bf16.mxu0 (!%p238_p2), %vm616_vm0, %v603_v7  ;;  %v463_v12 = vld [vmem:[%s2334_s6 + $0x4] sm:$0xf] (!%p238_p2)  ;;  %v462_v13 = vld [vmem:[%s2334_s6] sm:$0xf] (!%p238_p2)  ;;  %v1885_v21 = vmov (!%p238_p2), 0.0  }
   0xa   : > { %1852 = vmatpush3.bf16.msra.mxu1 (!%p238_p2), %v618_v8  ;;  %1762 = vmatpush3.bf16.msra.mxu0 (!%p238_p2), %v618_v8  ;;  %v465_v14 = vld [vmem:[%s2334_s6 + $0xc] sm:$0xf] (!%p238_p2)  ;;  %v464_v15 = vld [vmem:[%s2334_s6 + $0x8] sm:$0xf] (!%p238_p2)  ;;  %v467_v16 = vld [vmem:[%s2334_s6 + $0x14] sm:$0xf] (!%p238_p2) }
   0xb   : > { %424 = vperm.xlu1 (!%p238_p2), %1875, %v337_v3   ;;  %400 = vperm.xlu0 (!%p238_p2), %1874, %v335_v4   ;;  %v466_v17 = vld [vmem:[%s2334_s6 + $0x10] sm:$0xf] (!%p238_p2)  ;;  %v1993_v18 = vld [vmem:[%s2331_s3 + $0x8] sm:$0xf] (!%p238_p2)  ;;  %v469_v19 = vld [vmem:[%s2334_s6 + $0x1c] sm:$0xf] (!%p238_p2) }
   0xc   : > { %1855 = vmatprep.subr.msk.bf16.mxu1 (!%p238_p2), %vm616_vm0, %v1968_v11  ;;  %1856 = vmatprep.subr.msk.bf16.mxu0 (!%p238_p2), %vm616_vm0, %v1993_v18  ;;  %v468_v20 = vld [vmem:[%s2334_s6 + $0x18] sm:$0xf] (!%p238_p2)  ;;  %602 = vst.msk [vmem:[#allocation2 + $0x38] sm:$0xff] (!%p238_p2), %vm594_vm1, %v1885_v21  ;;  %595 = vst.msk [vmem:[#allocation2] sm:$0xff] (!%p238_p2), %vm594_vm1, %v1885_v21  ;;  %p269_p3 = scmp.lt.s32.totalorder (!%p238_p2), %s1648_s25, 1  ;;  %v347_v46 = vshrl.u32 (!%p238_p2), %v346_v34, 7 }
   0xd   : > { %596 = vst.msk [vmem:[#allocation2 + $0x8] sm:$0xff] %vm594_vm1, %v1885_v21  ;;  %597 = vst.msk [vmem:[#allocation2 + $0x10] sm:$0xff] %vm594_vm1, %v1885_v21  ;;  %v1657_v24 = vld [vmem:[%s2329_s1] ss:$0 sm:$0xff]  ;;  %v1886_v32 = vmov 839922192  }
   0xe   : > { %598 = vst.msk [vmem:[#allocation2 + $0x18] sm:$0xff] %vm594_vm1, %v1885_v21  ;;  %599 = vst.msk [vmem:[#allocation2 + $0x20] sm:$0xff] %vm594_vm1, %v1885_v21  ;;  %s2337_s25 = smov (!%p269_p3, %s1648_s25), 1  ;;  %v1658_v29 = vld [vmem:[%s2330_s2] ss:$0 sm:$0xff]  ;;  %v344_v33 = vunpack.c.l.s4 %v1886_v32  ;;  %vm704_vm2 = vcmask 63488  }
   0xf   : > { %352 = vperm.xlu1 %1875, %v331_v5   ;;  %340 = vperm.xlu0 %1874, %v330_v6   ;;  %600 = vst.msk [vmem:[#allocation2 + $0x28] sm:$0xff] %vm594_vm1, %v1885_v21  ;;  %601 = vst.msk [vmem:[#allocation2 + $0x30] sm:$0xff] %vm594_vm1, %v1885_v21  ;;  %s1714_s20 = sshll.u32 %s2337_s25, 6  ;;  %v1681_v21 = vld [vmem:[%s2331_s3 + $0xc] sm:$0xf]  ;;  %vm913_vm3 = vcmask 57344  }
  0x10   : > { %s273_s23 = scalar_lea.vmem %s2328_s0, %s1714_s20  ;;  %v345_v45 = vunpack.c.0.s8 %v344_v33  ;;  %v823_v33 = vsel %vm616_vm0, %v1993_v18, 0  ;;  %v918_v34 = vsel %vm616_vm0, %v1681_v21, 0  ;;  %vm1189_vm4 = vcmask 1046528   ;;  %s2280_s26 = scalar_lea.vmem %s2335_s7, %s1714_s20 }
  0x11   : > { %v286_v22 = vld [vmem:[%s273_s23 + $0x30] sm:$0xff]  ;;  %v287_v23 = vld [vmem:[%s273_s23 + $0x38] sm:$0xff]  ;;  %v284_v25 = vld [vmem:[%s273_s23 + $0x20] sm:$0xff]  ;;  %vm1315_vm5 = vcmask 1040384  }
  0x12   : > { %v285_v26 = vld [vmem:[%s273_s23 + $0x28] sm:$0xff]  ;;  %v301_v27 = vmul.f32 %v1657_v24, %v286_v22  ;;  %v302_v28 = vmul.f32 %v1657_v24, %v287_v23  ;;  %v299_v30 = vmul.f32 %v1657_v24, %v284_v25  ;;  %v280_v35 = vld [vmem:[%s273_s23] sm:$0xff]  ;;  %v282_v41 = vld [vmem:[%s273_s23 + $0x10] sm:$0xff]  ;;  %v2029_v57 = vsub.s32 %v345_v45, %v347_v46 }
  0x13   : > { %376 = vperm.xlu1 %1875, %v333_v9   ;;  %364 = vperm.xlu0 %1874, %v332_v10   ;;  %v300_v31 = vmul.f32 %v1657_v24, %v285_v26  ;;  %v281_v36 = vld [vmem:[%s273_s23 + $0x8] sm:$0xff]  ;;  %v283_v42 = vld [vmem:[%s273_s23 + $0x18] sm:$0xff]  ;;  %v295_v43 = vmul.f32 %v1657_v24, %v280_v35  ;;  %v297_v49 = vmul.f32 %v1657_v24, %v282_v41 }
  0x14   : > { %v316_v37 = vadd.f32 %v1658_v29, %v301_v27  ;;  %v317_v38 = vadd.f32 %v1658_v29, %v302_v28  ;;  %v314_v39 = vadd.f32 %v1658_v29, %v299_v30  ;;  %v296_v44 = vmul.f32 %v1657_v24, %v281_v36  ;;  %v1686_v36 = vld [vmem:[%s2331_s3 + $0x10] sm:$0xf] }
  0x15   : > { %v315_v40 = vadd.f32 %v1658_v29, %v300_v31  ;;  %v298_v50 = vmul.f32 %v1657_v24, %v283_v42  ;;  %v310_v55 = vadd.f32 %v1658_v29, %v295_v43  ;;  %v312_v58 = vadd.f32 %v1658_v29, %v297_v49  ;;  %v1696_v49 = vld [vmem:[%s2331_s3 + $0x18] sm:$0xf] }
  0x16   : > { %v324_v47 = vmax.f32 %v316_v37, 0.0  ;;  %v325_v48 = vmax.f32 %v317_v38, 0.0  ;;  %v322_v53 = vmax.f32 %v314_v39, 0.0  ;;  %v311_v56 = vadd.f32 %v1658_v29, %v296_v44  ;;  %v1691_v37 = vld [vmem:[%s2331_s3 + $0x14] sm:$0xf] }
  0x17   : > { %484 = vperm.xlu1 %1875, %v463_v12   ;;  %472 = vperm.xlu0 %1874, %v462_v13   ;;  %v323_v54 = vmax.f32 %v315_v40, 0.0  ;;  %v313_v59 = vadd.f32 %v1658_v29, %v298_v50  ;;  %v318_v0 = vmax.f32 %v310_v55, 0.0  ;;  %v320_v10 = vmax.f32 %v312_v58, 0.0 }
  0x18   : > { %v2031_v61 = vpack.c.bf16 %v325_v48, %v324_v47  ;;  %v319_v1 = vmax.f32 %v311_v56, 0.0  ;;  %v1012_v48 = vsel %vm616_vm0, %v1686_v36, 0 }
  0x19   : > { %v2033_v63 = vpack.c.bf16 %v323_v54, %v322_v53  ;;  %v321_v12 = vmax.f32 %v313_v59, 0.0  ;;  %v1106_v59 = vsel %vm616_vm0, %v1691_v37, 0 }
  0x1a   : > { %v2039_v13 = vpack.c.bf16 %v319_v1, %v318_v0 }
  0x1b   : > { %508 = vperm.xlu1 %1875, %v465_v14   ;;  %496 = vperm.xlu0 %1874, %v464_v15   ;;  %v2056_v24 = vpack.c.bf16 %v321_v12, %v320_v10  ;;  %v686_v12 = vld [vmem:[#allocation2 + $0x19] sm:$0xff] }
  0x1f   : > { %532 = vperm.xlu1 %1875, %v467_v16   ;;  %520 = vperm.xlu0 %1874, %v466_v17  }
  0x23   : > { %556 = vperm.xlu1 %1875, %v469_v19   ;;  %544 = vperm.xlu0 %1874, %v468_v20   ;;  %v721_v19 = vsel %vm616_vm0, %v1968_v11, 0 }
  0x86   : > { %v413_v51 = vpop.permute.xlu1 %412  ;;  %v389_v52 = vpop.permute.xlu0 %388 }
  0x87   : > { %v421_v2 = vrot.slane %v413_v51, %v2029_v57  ;;  %v397_v3 = vrot.slane %v389_v52, %v2029_v57 }
  0x8a   : > { %v425_v60 = vpop.permute.xlu1 %424  ;;  %v401_v62 = vpop.permute.xlu0 %400 }
  0x8b   : > { %v433_v4 = vrot.slane %v425_v60, %v2029_v57  ;;  %v409_v5 = vrot.slane %v401_v62, %v2029_v57  ;;  %v1701_v60 = vld [vmem:[%s2331_s3 + $0x1c] sm:$0xf]  ;;  %v1706_v62 = vld [vmem:[%s2331_s3 + $0x20] sm:$0xf] }
  0x8c   : > { %v1358_v0 = vsel %vm616_vm0, %v1701_v60, 0  ;;  %v1448_v1 = vsel %vm616_vm0, %v1706_v62, 0 }
  0x8d   : > { %v1662_v6 = vcombine.low %v421_v2, %v433_v4  ;;  %v1661_v7 = vcombine.low %v397_v3, %v409_v5  ;;  %v690_v2 = vld [vmem:[#allocation2 + $0x39] sm:$0x7f]  ;;  %v688_v3 = vld [vmem:[#allocation2 + $0x29] sm:$0xff] }
  0x8e   : > { %v353_v8 = vpop.permute.xlu1 %352  ;;  %v341_v9 = vpop.permute.xlu0 %340 }
  0x8f   : > { %v2042_v14 = vmul.bf16 %v1662_v6, %v2031_v61  ;;  %v361_v15 = vrot.slane %v353_v8, %v2029_v57  ;;  %v349_v16 = vrot.slane %v341_v9, %v2029_v57  ;;  %v2047_v17 = vmul.bf16 %v1661_v7, %v2033_v63  ;;  %v689_v7 = vld [vmem:[#allocation2 + $0x31] sm:$0xff] }
  0x91   : > { %v1659_v20 = vcombine.low %v349_v16, %v361_v15  ;;  %1767 = vmatprep.mubr.msk.bf16.mxu1 %vm594_vm1, %v2047_v17 }
  0x92   : > { %v377_v22 = vpop.permute.xlu1 %376  ;;  %v365_v23 = vpop.permute.xlu0 %364  ;;  %1768 = vmatmul.mubr.msk.bf16.vlgmr.msra.gmra.mrb[0].mxu1 %vm594_vm1, %v2042_v14 }
  0x93   : > { %v385_v25 = vrot.slane %v377_v22, %v2029_v57  ;;  %v373_v26 = vrot.slane %v365_v23, %v2029_v57  ;;  %1772 = vmatpush3.bf16.msra.mxu1 %v721_v19  ;;  %v2063_v11 = vmul.bf16 %v1659_v20, %v2039_v13  ;;  %1773 = vmatprep.mubr.msk.bf16.mxu1 %vm594_vm1, %v2039_v13  ;;  %v685_v19 = vld [vmem:[#allocation2 + $0x11] sm:$0xff] }
  0x94   : > { %1857 = vmatprep.subr.msk.bf16.mxu1 %vm616_vm0, %v1681_v21 }
  0x95   : > { %v1660_v27 = vcombine.low %v373_v26, %v385_v25  ;;  %1763 = vmatprep.mubr.msk.bf16.mxu0 %vm594_vm1, %v2063_v11 }
  0x96   : > { %v485_v28 = vpop.permute.xlu1 %484  ;;  %v473_v29 = vpop.permute.xlu0 %472 }
  0x97   : > { %v2071_v30 = vmul.bf16 %v1660_v27, %v2056_v24  ;;  %v493_v31 = vrot.slane %v485_v28, %v2029_v57  ;;  %v481_v32 = vrot.slane %v473_v29, %v2029_v57 }
  0x99   : > { %v1663_v35 = vcombine.low %v481_v32, %v493_v31  ;;  %1764 = vmatmul.mubr.msk.bf16.vlgmr.msra.gmra.mrb[0].mxu0 %vm594_vm1, %v2071_v30 }
  0x9a   : > { %v509_v38 = vpop.permute.xlu1 %508  ;;  %v497_v39 = vpop.permute.xlu0 %496  ;;  %1774 = vmatmul.mubr.msk.bf16.vlgmr.msra.gmra.mrb[4].mxu1 %vm594_vm1, %v2056_v24  ;;  %1782 = vmatpush3.bf16.msra.mxu0 %v823_v33 }
  0x9b   : > { %v590_v18 = vmul.bf16 %v1663_v35, %v2039_v13  ;;  %v517_v40 = vrot.slane %v509_v38, %v2029_v57  ;;  %v505_v41 = vrot.slane %v497_v39, %v2029_v57  ;;  %1792 = vmatpush3.bf16.msra.mxu1 %v918_v34  ;;  %1777 = vmatprep.mubr.msk.bf16.mxu1 %vm594_vm1, %v2033_v63 }
  0x9c   : > { %1858 = vmatprep.subr.msk.bf16.mxu0 %vm616_vm0, %v1686_v36  ;;  %1859 = vmatprep.subr.msk.bf16.mxu1 %vm616_vm0, %v1691_v37 }
  0x9d   : > { %v1664_v42 = vcombine.low %v505_v41, %v517_v40  ;;  %1783 = vmatprep.mubr.msk.bf16.mxu0 %vm594_vm1, %v590_v18 }
  0x9e   : > { %v533_v43 = vpop.permute.xlu1 %532  ;;  %v521_v44 = vpop.permute.xlu0 %520 }
  0x9f   : > { %v591_v45 = vmul.bf16 %v1664_v42, %v2056_v24  ;;  %v541_v46 = vrot.slane %v533_v43, %v2029_v57  ;;  %v529_v47 = vrot.slane %v521_v44, %v2029_v57 }
  0xa1   : > { %v1665_v50 = vcombine.low %v529_v47, %v541_v46  ;;  %1784 = vmatmul.mubr.msk.bf16.vlgmr.msra.gmra.mrb[4].mxu0 %vm594_vm1, %v591_v45 }
  0xa2   : > { %v557_v51 = vpop.permute.xlu1 %556  ;;  %v545_v52 = vpop.permute.xlu0 %544  ;;  %1778 = vmatmul.mubr.msk.bf16.gmra.mrb[8].mxu1 %vm594_vm1, %v2031_v61  ;;  %1802 = vmatpush3.bf16.msra.mxu0 %v1012_v48 }
  0xa3   : > { %v592_v53 = vmul.bf16 %v1665_v50, %v2033_v63  ;;  %v565_v54 = vrot.slane %v557_v51, %v2029_v57  ;;  %v553_v55 = vrot.slane %v545_v52, %v2029_v57  ;;  %1793 = vmatprep.mubr.msk.bf16.mxu1 %vm594_vm1, %v2063_v11  ;;  %1860 = vmatprep.subr.msk.bf16.mxu0 %vm616_vm0, %v1696_v49  ;;  %v1232_v57 = vsel %vm616_vm0, %v1696_v49, 0 }
  0xa5   : > { %v1666_v56 = vcombine.low %v553_v55, %v565_v54  ;;  %1787 = vmatprep.mubr.msk.bf16.mxu0 %vm594_vm1, %v592_v53 }
  0xa7   : > { %v593_v58 = vmul.bf16 %v1666_v56, %v2031_v61 }
  0xa9   : > { %1788 = vmatmul.mubr.msk.bf16.gmra.mrb[8].mxu0 %vm594_vm1, %v593_v58 }
  0xaa   : > { %1794 = vmatmul.mubr.msk.bf16.vlgmr.msra.gmra.mrb[12].mxu1 %vm594_vm1, %v2071_v30  ;;  %1803 = vmatprep.mubr.msk.bf16.mxu0 %vm594_vm1, %v2039_v13 }
  0xab   : > { %1797 = vmatprep.mubr.msk.bf16.mxu1 %vm594_vm1, %v2047_v17  ;;  %1812 = vmatpush3.bf16.msra.mxu1 %v1106_v59 }
  0xac   : > { %1861 = vmatprep.subr.msk.bf16.mxu1 %vm616_vm0, %v1701_v60 }
  0xb1   : > { %1804 = vmatmul.mubr.msk.bf16.vlgmr.msra.gmra.mrb[12].mxu0 %vm594_vm1, %v2056_v24 }
  0xb2   : > { %1798 = vmatmul.mubr.msk.bf16.gmra.mrb[16].mxu1 %vm594_vm1, %v2042_v14  ;;  %1807 = vmatprep.mubr.msk.bf16.mxu0 %vm594_vm1, %v2033_v63 }
  0xb3   : > { %1813 = vmatprep.mubr.msk.bf16.mxu1 %vm594_vm1, %v590_v18  ;;  %1822 = vmatpush3.bf16.msra.mxu0 %v1232_v57 }
  0xb4   : > { %1862 = vmatprep.subr.msk.bf16.mxu0 %vm616_vm0, %v1706_v62 }
  0xb9   : > { %1808 = vmatmul.mubr.msk.bf16.gmra.mrb[16].mxu0 %vm594_vm1, %v2031_v61 }
  0xba   : > { %1814 = vmatmul.mubr.msk.bf16.vlgmr.msra.gmra.mrb[20].mxu1 %vm594_vm1, %v591_v45  ;;  %1823 = vmatprep.mubr.msk.bf16.mxu0 %vm594_vm1, %v2063_v11 }
  0xbb   : > { %1817 = vmatprep.mubr.msk.bf16.mxu1 %vm594_vm1, %v592_v53  ;;  %1832 = vmatpush3.bf16.msra.mxu1 %v1358_v0 }
  0xc1   : > { %1824 = vmatmul.mubr.msk.bf16.vlgmr.msra.gmra.mrb[20].mxu0 %vm594_vm1, %v2071_v30 }
  0xc2   : > { %1818 = vmatmul.mubr.msk.bf16.gmra.mrb[24].mxu1 %vm594_vm1, %v593_v58  ;;  %1827 = vmatprep.mubr.msk.bf16.mxu0 %vm594_vm1, %v2047_v17 }
  0xc3   : > { %1842 = vmatpush3.bf16.msra.mxu0 %v1448_v1  ;;  %1833 = vmatprep.mubr.msk.bf16.mxu1 %vm594_vm1, %v2039_v13 }
  0xc9   : > { %1828 = vmatmul.mubr.msk.bf16.gmra.mrb[24].mxu0 %vm594_vm1, %v2042_v14  ;;  %v687_v14 = vld [vmem:[#allocation2 + $0x21] sm:$0xff] }
  0xca   : > { %1843 = vmatprep.mubr.msk.bf16.mxu0 %vm594_vm1, %v590_v18  ;;  %1834 = vmatmul.mubr.msk.bf16.vlgmr.msra.gmra.mrb[28].mxu1 %vm594_vm1, %v2056_v24 }
  0xcb   : > { %1837 = vmatprep.mubr.msk.bf16.mxu1 %vm594_vm1, %v2033_v63 }
  0xd1   : > { %1844 = vmatmul.mubr.msk.bf16.vlgmr.msra.gmra.mrb[28].mxu0 %vm594_vm1, %v591_v45 }
  0xd2   : > { %1847 = vmatprep.mubr.msk.bf16.mxu0 %vm594_vm1, %v592_v53  ;;  %1838 = vmatmul.mubr.msk.bf16.gmra.mrb[32].mxu1 %vm594_vm1, %v2031_v61  ;;  %v684_v61 = vld [vmem:[#allocation2 + $0x9] sm:$0xff] }
  0xd9   : > { %1848 = vmatmul.mubr.msk.bf16.gmra.mrb[32].mxu0 %vm594_vm1, %v593_v58 }
 0x165   : > { %v1769_v4 = vpop.f32.mrb[0].mxu1 }
 0x166   : > { %v697_v5 = vadd.f32 %v1769_v4, %v690_v2  ;;  %v670_v6 = vpop.f32.mrb[1].mxu1 }
 0x167   : > { %v695_v8 = vadd.f32 %v688_v3, %v670_v6  ;;  %v1770_v9 = vpop.f32.mrb[2].mxu1 }
 0x168   : > { %705 = vst.msk [vmem:[#allocation2 + $0x39] sm:$0x7f] %vm704_vm2, %v697_v5  ;;  %v673_v63 = vpop.f32.mrb[3].mxu1 }
 0x169   : > { %702 = vst.msk [vmem:[#allocation2 + $0x29] sm:$0xff] %vm594_vm1, %v695_v8  ;;  %v696_v10 = vadd.f32 %v689_v7, %v673_v63 }
 0x16b   : > { %703 = vst.msk [vmem:[#allocation2 + $0x31] sm:$0xff] %vm594_vm1, %v696_v10 }
 0x16c   : > { %v1765_v13 = vpop.f32.mrb[0].mxu0 }
 0x16d   : > { %v693_v15 = vadd.f32 %v1765_v13, %v686_v12  ;;  %v654_v16 = vpop.f32.mrb[1].mxu0  ;;  %v1775_v17 = vpop.f32.mrb[4].mxu1 }
 0x16e   : > { %v691_v20 = vadd.f32 %v684_v61, %v654_v16  ;;  %v1766_v21 = vpop.f32.mrb[2].mxu0  ;;  %v757_v22 = vpop.f32.mrb[5].mxu1 }
 0x16f   : > { %700 = vst.msk [vmem:[#allocation2 + $0x19] sm:$0xff] %vm594_vm1, %v693_v15  ;;  %v694_v23 = vadd.f32 %v1766_v21, %v687_v14  ;;  %v657_v24 = vpop.f32.mrb[3].mxu0  ;;  %v1776_v25 = vpop.f32.mrb[6].mxu1 }
 0x170   : > { %698 = vst.msk [vmem:[#allocation2 + $0x9] sm:$0xff] %vm594_vm1, %v691_v20  ;;  %v692_v26 = vadd.f32 %v685_v19, %v657_v24  ;;  %v760_v11 = vpop.f32.mrb[7].mxu1 }
 0x171   : > { %701 = vst.msk [vmem:[#allocation2 + $0x21] sm:$0xff] %vm594_vm1, %v694_v23 }
 0x172   : > { %699 = vst.msk [vmem:[#allocation2 + $0x11] sm:$0xff] %vm594_vm1, %v692_v26  ;;  %v793_v29 = vld [vmem:[#allocation2 + $0x38] sm:$0xff]  ;;  %v792_v40 = vld [vmem:[#allocation2 + $0x30] sm:$0xff] }
 0x174   : > { %v1785_v27 = vpop.f32.mrb[4].mxu0 }
 0x175   : > { %v1779_v28 = vpop.f32.mrb[8].mxu1  ;;  %v859_v30 = vpop.f32.mrb[5].mxu0 }
 0x176   : > { %v800_v31 = vadd.f32 %v1779_v28, %v793_v29  ;;  %v773_v32 = vpop.f32.mrb[9].mxu1  ;;  %v1786_v33 = vpop.f32.mrb[6].mxu0 }
 0x177   : > { %v787_v34 = vld [vmem:[#allocation2 + $0x8] sm:$0xff]  ;;  %v1780_v35 = vpop.f32.mrb[10].mxu1  ;;  %v862_v36 = vpop.f32.mrb[7].mxu0 }
 0x178   : > { %v794_v37 = vadd.f32 %v787_v34, %v757_v22  ;;  %v790_v38 = vld [vmem:[#allocation2 + $0x20] sm:$0xff]  ;;  %807 = vst.msk [vmem:[#allocation2 + $0x38] sm:$0xff] %vm594_vm1, %v800_v31  ;;  %v791_v39 = vld [vmem:[#allocation2 + $0x28] sm:$0xff]  ;;  %v776_v18 = vpop.f32.mrb[11].mxu1 }
 0x179   : > { %v789_v41 = vld [vmem:[#allocation2 + $0x18] sm:$0xff]  ;;  %v797_v42 = vadd.f32 %v1776_v25, %v790_v38  ;;  %v788_v43 = vld [vmem:[#allocation2 + $0x10] sm:$0xff]  ;;  %v798_v44 = vadd.f32 %v791_v39, %v773_v32  ;;  %v799_v45 = vadd.f32 %v792_v40, %v776_v18 }
 0x17a   : > { %801 = vst.msk [vmem:[#allocation2 + $0x8] sm:$0xff] %vm594_vm1, %v794_v37  ;;  %v796_v46 = vadd.f32 %v1775_v17, %v789_v41  ;;  %v795_v47 = vadd.f32 %v788_v43, %v760_v11 }
 0x17b   : > { %804 = vst.msk [vmem:[#allocation2 + $0x20] sm:$0xff] %vm594_vm1, %v797_v42  ;;  %805 = vst.msk [vmem:[#allocation2 + $0x28] sm:$0xff] %vm594_vm1, %v798_v44 }
 0x17c   : > { %806 = vst.msk [vmem:[#allocation2 + $0x30] sm:$0xff] %vm594_vm1, %v799_v45  ;;  %803 = vst.msk [vmem:[#allocation2 + $0x18] sm:$0xff] %vm594_vm1, %v796_v46  ;;  %v1789_v48 = vpop.f32.mrb[8].mxu0 }
 0x17d   : > { %802 = vst.msk [vmem:[#allocation2 + $0x10] sm:$0xff] %vm594_vm1, %v795_v47  ;;  %v875_v49 = vpop.f32.mrb[9].mxu0  ;;  %v1795_v50 = vpop.f32.mrb[12].mxu1 }
 0x17e   : > { %v1790_v51 = vpop.f32.mrb[10].mxu0  ;;  %v954_v52 = vpop.f32.mrb[13].mxu1 }
 0x17f   : > { %v897_v53 = vld [vmem:[#allocation2 + $0x3f] sm:$0x1]  ;;  %v878_v54 = vpop.f32.mrb[11].mxu0  ;;  %v1796_v55 = vpop.f32.mrb[14].mxu1 }
 0x180   : > { %v905_v56 = vadd.f32 %v1790_v51, %v897_v53  ;;  %v957_v58 = vpop.f32.mrb[15].mxu1 }
 0x181   : > { %v890_v59 = vld [vmem:[#allocation2 + $0x7] sm:$0xff] }
 0x182   : > { %v898_v60 = vadd.f32 %v890_v59, %v859_v30  ;;  %v894_v62 = vld [vmem:[#allocation2 + $0x27] sm:$0xff]  ;;  %914 = vst.msk [vmem:[#allocation2 + $0x3f] sm:$0x1] %vm913_vm3, %v905_v56 }
 0x183   : > { %v896_v57 = vld [vmem:[#allocation2 + $0x37] sm:$0xff]  ;;  %v895_v0 = vld [vmem:[#allocation2 + $0x2f] sm:$0xff]  ;;  %v893_v2 = vld [vmem:[#allocation2 + $0x1f] sm:$0xff]  ;;  %v902_v5 = vadd.f32 %v894_v62, %v875_v49 }
 0x184   : > { %v892_v1 = vld [vmem:[#allocation2 + $0x17] sm:$0xff]  ;;  %v891_v3 = vld [vmem:[#allocation2 + $0xf] sm:$0xff]  ;;  %v904_v4 = vadd.f32 %v1789_v48, %v896_v57  ;;  %v903_v6 = vadd.f32 %v895_v0, %v878_v54  ;;  %906 = vst.msk [vmem:[#allocation2 + $0x7] sm:$0xff] %vm594_vm1, %v898_v60  ;;  %v901_v8 = vadd.f32 %v1786_v33, %v893_v2  ;;  %v2181_v63 = vpop.f32.mrb[12].mxu0 }
 0x185   : > { %v900_v7 = vadd.f32 %v1785_v27, %v892_v1  ;;  %v899_v9 = vadd.f32 %v891_v3, %v862_v36  ;;  %910 = vst.msk [vmem:[#allocation2 + $0x27] sm:$0xff] %vm594_vm1, %v902_v5  ;;  %v1799_v10 = vpop.f32.mrb[16].mxu1  ;;  %v1048_v12 = vpop.f32.mrb[13].mxu0 }
 0x186   : > { %912 = vst.msk [vmem:[#allocation2 + $0x37] sm:$0xff] %vm594_vm1, %v904_v4  ;;  %911 = vst.msk [vmem:[#allocation2 + $0x2f] sm:$0xff] %vm594_vm1, %v903_v6  ;;  %v970_v61 = vpop.f32.mrb[17].mxu1  ;;  %v2189_v13 = vpop.f32.mrb[14].mxu0 }
 0x187   : > { %908 = vst.msk [vmem:[#allocation2 + $0x17] sm:$0xff] %vm594_vm1, %v900_v7  ;;  %909 = vst.msk [vmem:[#allocation2 + $0x1f] sm:$0xff] %vm594_vm1, %v901_v8  ;;  %v1800_v14 = vpop.f32.mrb[18].mxu1  ;;  %v2191_v15 = vpop.f32.mrb[15].mxu0 }
 0x188   : > { %907 = vst.msk [vmem:[#allocation2 + $0xf] sm:$0xff] %vm594_vm1, %v899_v9  ;;  %v973_v16 = vpop.f32.mrb[19].mxu1 }
 0x18b   : > { %v985_v17 = vld [vmem:[#allocation2 + $0x1] sm:$0xff] }
 0x18c   : > { %v993_v19 = vadd.f32 %v985_v17, %v954_v52  ;;  %v1809_v23 = vpop.f32.mrb[16].mxu0 }
 0x18d   : > { %v991_v20 = vld [vmem:[#allocation2 + $0x31] sm:$0xff]  ;;  %v992_v21 = vld [vmem:[#allocation2 + $0x39] sm:$0x7f]  ;;  %v990_v22 = vld [vmem:[#allocation2 + $0x29] sm:$0xff]  ;;  %v1815_v29 = vpop.f32.mrb[20].mxu1  ;;  %v1064_v30 = vpop.f32.mrb[17].mxu0 }
 0x18e   : > { %v988_v25 = vld [vmem:[#allocation2 + $0x19] sm:$0xff]  ;;  %v999_v11 = vadd.f32 %v1799_v10, %v991_v20  ;;  %v1000_v27 = vadd.f32 %v1800_v14, %v992_v21  ;;  %v998_v28 = vadd.f32 %v990_v22, %v973_v16  ;;  %1001 = vst.msk [vmem:[#allocation2 + $0x1] sm:$0xff] %vm594_vm1, %v993_v19  ;;  %v989_v34 = vld [vmem:[#allocation2 + $0x21] sm:$0xff]  ;;  %v1142_v35 = vpop.f32.mrb[21].mxu1  ;;  %v1810_v36 = vpop.f32.mrb[18].mxu0  ;;  %v1193_v18 = vrot.slane %v1815_v29, 1 }
 0x18f   : > { %v987_v24 = vld [vmem:[#allocation2 + $0x11] sm:$0xff]  ;;  %v986_v26 = vld [vmem:[#allocation2 + $0x9] sm:$0xff]  ;;  %v996_v32 = vadd.f32 %v1796_v55, %v988_v25  ;;  %v997_v37 = vadd.f32 %v989_v34, %v970_v61  ;;  %v1816_v38 = vpop.f32.mrb[22].mxu1  ;;  %v1067_v39 = vpop.f32.mrb[19].mxu0  ;;  %v1190_v42 = vrot.slane %v1142_v35, 1 }
 0x190   : > { %v995_v31 = vadd.f32 %v1795_v50, %v987_v24  ;;  %v994_v33 = vadd.f32 %v986_v26, %v957_v58  ;;  %1007 = vst.msk [vmem:[#allocation2 + $0x31] sm:$0xff] %vm594_vm1, %v999_v11  ;;  %1006 = vst.msk [vmem:[#allocation2 + $0x29] sm:$0xff] %vm594_vm1, %v998_v28  ;;  %v1195_v40 = vrot.slane %v1816_v38, 1  ;;  %v1145_v41 = vpop.f32.mrb[23].mxu1 }
 0x191   : > { %1008 = vst.msk [vmem:[#allocation2 + $0x39] sm:$0x7f] %vm704_vm2, %v1000_v27  ;;  %v1191_v43 = vrot.slane %v1145_v41, 1 }
 0x192   : > { %1003 = vst.msk [vmem:[#allocation2 + $0x11] sm:$0xff] %vm594_vm1, %v995_v31  ;;  %1004 = vst.msk [vmem:[#allocation2 + $0x19] sm:$0xff] %vm594_vm1, %v996_v32  ;;  %v2202_v44 = vsel %vm1189_vm4, %v1193_v18, %v1195_v40 }
 0x193   : > { %1002 = vst.msk [vmem:[#allocation2 + $0x9] sm:$0xff] %vm594_vm1, %v994_v33  ;;  %1005 = vst.msk [vmem:[#allocation2 + $0x21] sm:$0xff] %vm594_vm1, %v997_v37  ;;  %v1192_v45 = vsel %vm1189_vm4, %v1190_v42, %v1191_v43  ;;  %v2206_v46 = vsel %vm1189_vm4, %v1191_v43, %v1193_v18 }
 0x194   : > { %v1825_v47 = vpop.f32.mrb[20].mxu0 }
 0x195   : > { %v1079_v48 = vld [vmem:[#allocation2] sm:$0xff]  ;;  %v1819_v49 = vpop.f32.mrb[24].mxu1  ;;  %v1268_v50 = vpop.f32.mrb[21].mxu0  ;;  %v1319_v54 = vrot.slane %v1825_v47, 7 }
 0x196   : > { %v1087_v51 = vadd.f32 %v1079_v48, %v1048_v12  ;;  %v1201_v55 = vrot.slane %v1819_v49, 1  ;;  %v1158_v56 = vpop.f32.mrb[25].mxu1  ;;  %v1826_v58 = vpop.f32.mrb[22].mxu0 }
 0x197   : > { %v1085_v52 = vld [vmem:[#allocation2 + $0x30] sm:$0xff]  ;;  %v1197_v1 = vrot.slane %v1158_v56, 1  ;;  %v1321_v2 = vrot.slane %v1826_v58, 7  ;;  %v1820_v3 = vpop.f32.mrb[26].mxu1  ;;  %v1271_v10 = vpop.f32.mrb[23].mxu0 }
 0x198   : > { %v1086_v53 = vld [vmem:[#allocation2 + $0x38] sm:$0xff]  ;;  %v1093_v62 = vadd.f32 %v1809_v23, %v1085_v52  ;;  %1095 = vst.msk [vmem:[#allocation2] sm:$0xff] %vm594_vm1, %v1087_v51  ;;  %v1203_v9 = vrot.slane %v1820_v3, 1  ;;  %v1161_v12 = vpop.f32.mrb[27].mxu1  ;;  %v1317_v17 = vrot.slane %v1271_v10, 7 }
 0x199   : > { %v1082_v60 = vld [vmem:[#allocation2 + $0x18] sm:$0xff]  ;;  %v1094_v0 = vadd.f32 %v1810_v36, %v1086_v53  ;;  %v1198_v16 = vsel %vm1189_vm4, %v1195_v40, %v1197_v1  ;;  %v1199_v19 = vrot.slane %v1161_v12, 1 }
 0x19a   : > { %v1081_v59 = vld [vmem:[#allocation2 + $0x10] sm:$0xff]  ;;  %v1080_v57 = vld [vmem:[#allocation2 + $0x8] sm:$0xff]  ;;  %v1090_v5 = vadd.f32 %v2189_v13, %v1082_v60  ;;  %v1083_v7 = vld [vmem:[#allocation2 + $0x20] sm:$0xff]  ;;  %1101 = vst.msk [vmem:[#allocation2 + $0x30] sm:$0xff] %vm594_vm1, %v1093_v62  ;;  %v1316_v13 = vrot.slane %v1268_v50, 7  ;;  %v2226_v21 = vsel %vm1315_vm5, %v1317_v17, %v1319_v54 }
 0x19b   : > { %v1089_v4 = vadd.f32 %v2181_v63, %v1081_v59  ;;  %v1088_v6 = vadd.f32 %v1080_v57, %v2191_v15  ;;  %v1084_v8 = vld [vmem:[#allocation2 + $0x28] sm:$0xff]  ;;  %v1091_v61 = vadd.f32 %v1083_v7, %v1064_v30  ;;  %1102 = vst.msk [vmem:[#allocation2 + $0x38] sm:$0xff] %vm594_vm1, %v1094_v0  ;;  %v2216_v63 = vsel %vm1315_vm5, %v1319_v54, %v1321_v2 }
 0x19c   : > { %v1092_v14 = vadd.f32 %v1084_v8, %v1067_v39  ;;  %1098 = vst.msk [vmem:[#allocation2 + $0x18] sm:$0xff] %vm594_vm1, %v1090_v5  ;;  %v1204_v15 = vsel %vm1189_vm4, %v1201_v55, %v1203_v9  ;;  %v1318_v20 = vsel %vm1315_vm5, %v1316_v13, %v1317_v17  ;;  %v1200_v22 = vsel %vm1189_vm4, %v1197_v1, %v1199_v19  ;;  %v1829_v24 = vpop.f32.mrb[24].mxu0 }
 0x19d   : > { %1097 = vst.msk [vmem:[#allocation2 + $0x10] sm:$0xff] %vm594_vm1, %v1089_v4  ;;  %1096 = vst.msk [vmem:[#allocation2 + $0x8] sm:$0xff] %vm594_vm1, %v1088_v6  ;;  %v1202_v23 = vsel %vm1189_vm4, %v1199_v19, %v1201_v55  ;;  %v1284_v25 = vpop.f32.mrb[25].mxu0  ;;  %v2230_v26 = vpop.f32.mrb[28].mxu1  ;;  %v1327_v30 = vrot.slane %v1829_v24, 7 }
 0x19e   : > { %1099 = vst.msk [vmem:[#allocation2 + $0x20] sm:$0xff] %vm594_vm1, %v1091_v61  ;;  %1100 = vst.msk [vmem:[#allocation2 + $0x28] sm:$0xff] %vm594_vm1, %v1092_v14  ;;  %v1323_v11 = vrot.slane %v1284_v25, 7  ;;  %v1830_v27 = vpop.f32.mrb[26].mxu0  ;;  %v1394_v28 = vpop.f32.mrb[29].mxu1 }
 0x19f   : > { %v1173_v29 = vld [vmem:[#allocation2] sm:$0xff]  ;;  %v1329_v31 = vrot.slane %v1830_v27, 7  ;;  %v1287_v32 = vpop.f32.mrb[27].mxu0  ;;  %v2232_v33 = vpop.f32.mrb[30].mxu1 }
 0x1a0   : > { %v1213_v34 = vadd.f32 %v1192_v45, %v1173_v29  ;;  %v1324_v37 = vsel %vm1315_vm5, %v1321_v2, %v1323_v11  ;;  %v1325_v38 = vrot.slane %v1287_v32, 7  ;;  %v2235_v39 = vpop.f32.mrb[31].mxu1 }
 0x1a1   : > { %v1179_v35 = vld [vmem:[#allocation2 + $0x30] sm:$0xff]  ;;  %v1330_v47 = vsel %vm1315_vm5, %v1327_v30, %v1329_v31 }
 0x1a2   : > { %v1180_v36 = vld [vmem:[#allocation2 + $0x38] sm:$0x7f]  ;;  %v1219_v42 = vadd.f32 %v1204_v15, %v1179_v35  ;;  %1221 = vst.msk [vmem:[#allocation2] sm:$0xff] %vm594_vm1, %v1213_v34  ;;  %v1326_v52 = vsel %vm1315_vm5, %v1323_v11, %v1325_v38  ;;  %v1328_v55 = vsel %vm1315_vm5, %v1325_v38, %v1327_v30 }
 0x1a3   : > { %v1176_v41 = vld [vmem:[#allocation2 + $0x18] sm:$0xff]  ;;  %v1220_v43 = vadd.f32 %v1203_v9, %v1180_v36 }
 0x1a4   : > { %v1175_v18 = vld [vmem:[#allocation2 + $0x10] sm:$0xff]  ;;  %v1174_v40 = vld [vmem:[#allocation2 + $0x8] sm:$0xff]  ;;  %v1216_v45 = vadd.f32 %v1198_v16, %v1176_v41  ;;  %1227 = vst.msk [vmem:[#allocation2 + $0x30] sm:$0xff] %vm594_vm1, %v1219_v42 }
 0x1a5   : > { %v1215_v48 = vadd.f32 %v2202_v44, %v1175_v18  ;;  %v1214_v49 = vadd.f32 %v2206_v46, %v1174_v40  ;;  %v1177_v50 = vld [vmem:[#allocation2 + $0x20] sm:$0xff]  ;;  %v1178_v51 = vld [vmem:[#allocation2 + $0x28] sm:$0xff]  ;;  %1228 = vst.msk [vmem:[#allocation2 + $0x38] sm:$0x7f] %vm704_vm2, %v1220_v43  ;;  %v1845_v44 = vpop.f32.mrb[28].mxu0  ;;  %v2250_v56 = vpop.f32.mrb[32].mxu1 }
 0x1a6   : > { %v1217_v53 = vadd.f32 %v1200_v22, %v1177_v50  ;;  %v1218_v54 = vadd.f32 %v1202_v23, %v1178_v51  ;;  %1224 = vst.msk [vmem:[#allocation2 + $0x18] sm:$0xff] %vm594_vm1, %v1216_v45  ;;  %v1484_v46 = vpop.f32.mrb[29].mxu0  ;;  %v1409_v59 = vpop.f32.mrb[33].mxu1  ;;  %v1529_v60 = vrot.slane %v1845_v44, 1 }
 0x1a7   : > { %1223 = vst.msk [vmem:[#allocation2 + $0x10] sm:$0xff] %vm594_vm1, %v1215_v48  ;;  %1222 = vst.msk [vmem:[#allocation2 + $0x8] sm:$0xff] %vm594_vm1, %v1214_v49  ;;  %v1846_v58 = vpop.f32.mrb[30].mxu0  ;;  %v1840_v0 = vpop.f32.mrb[34].mxu1 }
 0x1a8   : > { %1225 = vst.msk [vmem:[#allocation2 + $0x20] sm:$0xff] %vm594_vm1, %v1217_v53  ;;  %1226 = vst.msk [vmem:[#allocation2 + $0x28] sm:$0xff] %vm594_vm1, %v1218_v54  ;;  %v1531_v57 = vrot.slane %v1846_v58, 1  ;;  %v1486_v62 = vpop.f32.mrb[31].mxu0  ;;  %v1412_v2 = vpop.f32.mrb[35].mxu1 }
 0x1a9   : > { %v1528_v1 = vrot.slane %v1486_v62, 1  ;;  %v1299_v3 = vld [vmem:[#allocation2] sm:$0xff] }
 0x1aa   : > { %v2253_v4 = vsel %vm1189_vm4, %v1529_v60, %v1531_v57  ;;  %v1339_v5 = vadd.f32 %v1318_v20, %v1299_v3 }
 0x1ab   : > { %v1305_v6 = vld [vmem:[#allocation2 + $0x30] sm:$0xff]  ;;  %v1530_v8 = vsel %vm1189_vm4, %v1528_v1, %v1529_v60 }
 0x1ac   : > { %v1306_v7 = vld [vmem:[#allocation2 + $0x38] sm:$0x1]  ;;  %v1345_v61 = vadd.f32 %v1330_v47, %v1305_v6  ;;  %1347 = vst.msk [vmem:[#allocation2] sm:$0xff] %vm594_vm1, %v1339_v5  ;;  %v1849_v22 = vpop.f32.mrb[32].mxu0 }
 0x1ad   : > { %v1302_v12 = vld [vmem:[#allocation2 + $0x18] sm:$0xff]  ;;  %v1346_v14 = vadd.f32 %v1329_v31, %v1306_v7  ;;  %v1499_v24 = vpop.f32.mrb[33].mxu0  ;;  %v1537_v25 = vrot.slane %v1849_v22, 1  ;;  %v2271_v31 = vld [vmem:[%s2332_s4] ss:$0 sm:$0xff] }
 0x1ae   : > { %v1301_v9 = vld [vmem:[#allocation2 + $0x10] sm:$0xff]  ;;  %v1300_v10 = vld [vmem:[#allocation2 + $0x8] sm:$0xff]  ;;  %v1342_v15 = vadd.f32 %v1324_v37, %v1302_v12  ;;  %1353 = vst.msk [vmem:[#allocation2 + $0x30] sm:$0xff] %vm594_vm1, %v1345_v61 }
 0x1af   : > { %v1341_v16 = vadd.f32 %v2216_v63, %v1301_v9  ;;  %v1340_v13 = vadd.f32 %v2226_v21, %v1300_v10  ;;  %v1303_v17 = vld [vmem:[#allocation2 + $0x20] sm:$0xff]  ;;  %v1304_v19 = vld [vmem:[#allocation2 + $0x28] sm:$0xff]  ;;  %1354 = vst.msk [vmem:[#allocation2 + $0x38] sm:$0x1] %vm913_vm3, %v1346_v14  ;;  %v1533_v63 = vrot.slane %v1499_v24, 1  ;;  %v1850_v21 = vpop.f32.mrb[34].mxu0 }
 0x1b0   : > { %v1343_v20 = vadd.f32 %v1326_v52, %v1303_v17  ;;  %v1344_v23 = vadd.f32 %v1328_v55, %v1304_v19  ;;  %1350 = vst.msk [vmem:[#allocation2 + $0x18] sm:$0xff] %vm594_vm1, %v1342_v15  ;;  %v1539_v11 = vrot.slane %v1850_v21, 1  ;;  %v1502_v27 = vpop.f32.mrb[35].mxu0 }
 0x1b1   : > { %1349 = vst.msk [vmem:[#allocation2 + $0x10] sm:$0xff] %vm594_vm1, %v1341_v16  ;;  %1348 = vst.msk [vmem:[#allocation2 + $0x8] sm:$0xff] %vm594_vm1, %v1340_v13  ;;  %v1534_v28 = vsel %vm1189_vm4, %v1531_v57, %v1533_v63  ;;  %v1535_v29 = vrot.slane %v1502_v27, 1 }
 0x1b2   : > { %1351 = vst.msk [vmem:[#allocation2 + $0x20] sm:$0xff] %vm594_vm1, %v1343_v20  ;;  %1352 = vst.msk [vmem:[#allocation2 + $0x28] sm:$0xff] %vm594_vm1, %v1344_v23  ;;  %v1540_v30 = vsel %vm1189_vm4, %v1537_v25, %v1539_v11 }
 0x1b3   : > { %v1536_v32 = vsel %vm1189_vm4, %v1533_v63, %v1535_v29  ;;  %v1538_v34 = vsel %vm1189_vm4, %v1535_v29, %v1537_v25  ;;  %v1424_v35 = vld [vmem:[#allocation2] sm:$0xff] }
 0x1b4   : > { %v1431_v37 = vadd.f32 %v1424_v35, %v2235_v39 }
 0x1b5   : > { %v1430_v38 = vld [vmem:[#allocation2 + $0x30] sm:$0xff] }
 0x1b6   : > { %v1569_v36 = vld [vmem:[#allocation2 + $0x38] sm:$0xff]  ;;  %v1437_v43 = vadd.f32 %v1840_v0, %v1430_v38  ;;  %1438 = vst.msk [vmem:[#allocation2] sm:$0xff] %vm594_vm1, %v1431_v37 }
 0x1b7   : > { %v1584_v18 = vadd.f32 %v2271_v31, %v1569_v36  ;;  %v1427_v42 = vld [vmem:[#allocation2 + $0x18] sm:$0xff] }
 0x1b8   : > { %v1425_v40 = vld [vmem:[#allocation2 + $0x8] sm:$0xff]  ;;  %v1426_v41 = vld [vmem:[#allocation2 + $0x10] sm:$0xff]  ;;  %v1434_v45 = vadd.f32 %v1427_v42, %v1409_v59  ;;  %1444 = vst.msk [vmem:[#allocation2 + $0x30] sm:$0xff] %vm594_vm1, %v1437_v43 }
 0x1b9   : > { %v1432_v47 = vadd.f32 %v2230_v26, %v1425_v40  ;;  %v1433_v48 = vadd.f32 %v2232_v33, %v1426_v41  ;;  %v1429_v49 = vld [vmem:[#allocation2 + $0x28] sm:$0xff]  ;;  %v1428_v50 = vld [vmem:[#allocation2 + $0x20] sm:$0xff]  ;;  %1592 = vst.msk [vmem:[%s2280_s26 + $0x38] sm:$0xff] %vm594_vm1, %v1584_v18 }
 0x1ba   : > { %v1436_v39 = vadd.f32 %v2250_v56, %v1429_v49  ;;  %v1435_v51 = vadd.f32 %v1428_v50, %v1412_v2  ;;  %1441 = vst.msk [vmem:[#allocation2 + $0x18] sm:$0xff] %vm594_vm1, %v1434_v45 }
 0x1bb   : > { %1439 = vst.msk [vmem:[#allocation2 + $0x8] sm:$0xff] %vm594_vm1, %v1432_v47  ;;  %1440 = vst.msk [vmem:[#allocation2 + $0x10] sm:$0xff] %vm594_vm1, %v1433_v48 }
 0x1bc   : > { %1443 = vst.msk [vmem:[#allocation2 + $0x28] sm:$0xff] %vm594_vm1, %v1436_v39  ;;  %1442 = vst.msk [vmem:[#allocation2 + $0x20] sm:$0xff] %vm594_vm1, %v1435_v51 }
 0x1bd   : > { %v1514_v26 = vld [vmem:[#allocation2] sm:$0xff] }
 0x1be   : > { %v1548_v33 = vadd.f32 %v1530_v8, %v1514_v26 }
 0x1bf   : > { %v1520_v52 = vld [vmem:[#allocation2 + $0x30] sm:$0x7f] }
 0x1c0   : > { %v1554_v44 = vadd.f32 %v1539_v11, %v1520_v52  ;;  %1555 = vst.msk [vmem:[#allocation2] sm:$0xff] %vm594_vm1, %v1548_v33 }
 0x1c1   : > { %v1517_v55 = vld [vmem:[#allocation2 + $0x18] sm:$0xff] }
 0x1c2   : > { %v1515_v53 = vld [vmem:[#allocation2 + $0x8] sm:$0xff]  ;;  %v1516_v54 = vld [vmem:[#allocation2 + $0x10] sm:$0xff]  ;;  %v1551_v59 = vadd.f32 %v1536_v32, %v1517_v55  ;;  %1561 = vst.msk [vmem:[#allocation2 + $0x30] sm:$0x7f] %vm704_vm2, %v1554_v44 }
 0x1c3   : > { %v1549_v46 = vadd.f32 %v2253_v4, %v1515_v53  ;;  %v1550_v56 = vadd.f32 %v1534_v28, %v1516_v54  ;;  %v1519_v58 = vld [vmem:[#allocation2 + $0x28] sm:$0xff]  ;;  %v1518_v60 = vld [vmem:[#allocation2 + $0x20] sm:$0xff] }
 0x1c4   : > { %v1553_v57 = vadd.f32 %v1540_v30, %v1519_v58  ;;  %v1552_v62 = vadd.f32 %v1538_v34, %v1518_v60  ;;  %1558 = vst.msk [vmem:[#allocation2 + $0x18] sm:$0xff] %vm594_vm1, %v1551_v59 }
 0x1c5   : > { %1556 = vst.msk [vmem:[#allocation2 + $0x8] sm:$0xff] %vm594_vm1, %v1549_v46  ;;  %1557 = vst.msk [vmem:[#allocation2 + $0x10] sm:$0xff] %vm594_vm1, %v1550_v56 }
 0x1c6   : > { %1560 = vst.msk [vmem:[#allocation2 + $0x28] sm:$0xff] %vm594_vm1, %v1553_v57  ;;  %1559 = vst.msk [vmem:[#allocation2 + $0x20] sm:$0xff] %vm594_vm1, %v1552_v62 }
 0x1c7   : > { %v1562_v0 = vld [vmem:[#allocation2] sm:$0xff] }
 0x1c8   : > { %v1577_v1 = vadd.f32 %v2271_v31, %v1562_v0 }
 0x1c9   : > { %v1568_v2 = vld [vmem:[#allocation2 + $0x30] sm:$0xff] }
 0x1ca   : > { %v1583_v6 = vadd.f32 %v2271_v31, %v1568_v2  ;;  %1585 = vst.msk [vmem:[%s2280_s26] sm:$0xff] %vm594_vm1, %v1577_v1 }
 0x1cb   : > { %v1565_v5 = vld [vmem:[#allocation2 + $0x18] sm:$0xff] }
 0x1cc   : > { %v1563_v3 = vld [vmem:[#allocation2 + $0x8] sm:$0xff]  ;;  %v1564_v4 = vld [vmem:[#allocation2 + $0x10] sm:$0xff]  ;;  %v1580_v10 = vadd.f32 %v2271_v31, %v1565_v5  ;;  %1591 = vst.msk [vmem:[%s2280_s26 + $0x30] sm:$0xff] %vm594_vm1, %v1583_v6 }
 0x1cd   : > { %v1578_v7 = vadd.f32 %v2271_v31, %v1563_v3  ;;  %v1579_v8 = vadd.f32 %v2271_v31, %v1564_v4  ;;  %v1567_v9 = vld [vmem:[#allocation2 + $0x28] sm:$0xff]  ;;  %v1566_v12 = vld [vmem:[#allocation2 + $0x20] sm:$0xff] }
 0x1ce   : > { %v1582_v61 = vadd.f32 %v2271_v31, %v1567_v9  ;;  %v1581_v14 = vadd.f32 %v2271_v31, %v1566_v12  ;;  %1588 = vst.msk [vmem:[%s2280_s26 + $0x18] sm:$0xff] %vm594_vm1, %v1580_v10 }
 0x1cf   : > { %1586 = vst.msk [vmem:[%s2280_s26 + $0x8] sm:$0xff] %vm594_vm1, %v1578_v7  ;;  %1587 = vst.msk [vmem:[%s2280_s26 + $0x10] sm:$0xff] %vm594_vm1, %v1579_v8 }
 0x1d0   : > { %1590 = vst.msk [vmem:[%s2280_s26 + $0x28] sm:$0xff] %vm594_vm1, %v1582_v61  ;;  %1589 = vst.msk [vmem:[%s2280_s26 + $0x20] sm:$0xff] %vm594_vm1, %v1581_v14 }
 0x1d1 PF: > { %s17_s24 = sadd.s32 1, %s1882_s24  }
 0x1d2   : > { %p14_p4 = scmp.ge.s32.totalorder %s17_s24, 4  }
 0x1d4   :  { %16 = sbr.rel (!%p14_p4) target bundleno = 1 (0x1), region = 86 }

</bundles_post_ra>
